<compile_context>
chip_gen: v5e
topology: v5e:2x2
jax: 0.10.0
libtpu: 0.0.40
codegen_flags: <defaults>
</compile_context>

<pallas_src>
import numpy as np
import jax
import jax.numpy as jnp
from jax.experimental import pallas as pl
from jax.experimental.pallas import tpu as pltpu


DPAD = 128  # head output padded to one lane-dense vreg width


# --------------------------- host-side param folding ---------------------------

def fold_params(params, H, W, dout_pad=DPAD):
    """Fold BN into the linear head, fold the 1/(H*W) pooling scale into it, and
    expand the 3x3 conv weight into a single (KPAD, W*Cstem) matrix so the whole
    conv becomes ONE matmul over kh-stacked padded-image rows. Host-side, once."""
    cw = np.asarray(params["conv_w"], np.float32)            # (KH, KW, Cin, Cstem)
    KH, KW, Cin, Cstem = cw.shape
    Wp = W + 2
    WCIN = Wp * Cin                                          # per-tap K width
    WC = W * Cstem                                           # conv output lanes

    # Banded conv weight: wband[kh, (w+kw)*Cin + c, w*Cstem + o] = cw[kh, kw, c, o]
    wband = np.zeros((KH, WCIN, WC), np.float32)
    for kh in range(KH):
        for kw in range(KW):
            for w in range(W):
                wband[kh, (w + kw) * Cin:(w + kw + 1) * Cin,
                      w * Cstem:(w + 1) * Cstem] = cw[kh, kw]

    # Fold the kh axis into K and zero-pad K to a multiple of 128 (tile-aligned MXU K).
    kpad = ((KH * WCIN + 127) // 128) * 128
    w_comb = np.zeros((kpad, WC), np.float32)
    w_comb[:KH * WCIN] = wband.reshape(KH * WCIN, WC)

    # Conv bias tiled over the w positions packed into lanes.
    cb = np.asarray(params["conv_b"], np.float32)            # (Cstem,)
    cb_tiled = np.tile(cb[None, :], (1, W))                  # (1, W*Cstem)

    # Fold BatchNorm1d (eval running stats) into the Linear layer.
    gamma = np.asarray(params["bn_gamma"], np.float32)
    beta = np.asarray(params["bn_beta"], np.float32)
    mean = np.asarray(params["bn_mean"], np.float32)
    var = np.asarray(params["bn_var"], np.float32)
    lin_w = np.asarray(params["lin_w"], np.float32)          # (Cstem, Dout)
    lin_b = np.asarray(params["lin_b"], np.float32)          # (Dout,)
    s = gamma / np.sqrt(var + 1e-5)
    w_fold = s[:, None] * lin_w                              # (Cstem, Dout)
    b_fold = lin_b + (beta - mean * s) @ lin_w               # (Dout,)
    Dout = w_fold.shape[1]

    # Fold the 1/(H*W) average-pool scale, tile over the w lane positions and pad
    # the output dim to 128 so the kernel output is lane-dense.
    whead_tiled = np.tile(w_fold / float(H * W), (W, 1))     # (W*Cstem, Dout)
    whead_tiled = np.pad(whead_tiled, ((0, 0), (0, dout_pad - Dout)))
    bhead = np.pad(b_fold[None, :], ((0, 0), (0, dout_pad - Dout)))

    return {
        "w_comb": jnp.asarray(w_comb, jnp.bfloat16),          # (KPAD, W*Cstem) bf16
        "cb_tiled": jnp.asarray(cb_tiled, jnp.float32),       # (1, W*Cstem)
        "whead_tiled": jnp.asarray(whead_tiled, jnp.float32), # f32 head (SequentialFP32)
        "bhead": jnp.asarray(bhead, jnp.float32),
        "dout": Dout,
        "kpad": kpad,
        "kh": KH,
        "wcin": WCIN,
    }


# ------------------------------ block-size choice -------------------------------

def _choose_bblk(B, H):
    """Stack BBLK images along M so the stem matmul fills the MXU (M~256 for
    v6e/v7x, M~128 for v5e) while keeping >= 2 grid steps so the 'parallel'
    batch axis still shards across v7x's 2 TensorCores."""
    for target in (256, 128):
        cand = max(1, target // H)
        if B >= 2 * cand:
            return cand
    return max(1, min(B, max(1, 128 // H)))


# ------------------------------- fused forward ---------------------------------

def cnn_embedder_forward(images_nchw, folded):
    """images_nchw: (B, 3, H, W) float32 -> (B, out_features) float32."""
    B, Cin, H, W = images_nchw.shape
    Hp, Wp = H + 2, W + 2
    KH = folded["kh"]
    WCIN = folded["wcin"]
    KPAD, WC = folded["w_comb"].shape                        # (KPAD, W*Cstem)
    DP = folded["whead_tiled"].shape[1]

    # Cheap layout prep (XLA): NCHW -> padded NHWC -> kh-stacked K rows, zero-padded
    # to KPAD lanes, bf16. This is the ONLY image-sized HBM stream the kernel reads
    # (no 9x im2col; ~3x the raw image, still tiny).
    x = jnp.transpose(images_nchw, (0, 2, 3, 1))
    xp = jnp.pad(x, ((0, 0), (1, 1), (1, 1), (0, 0)))
    x2 = xp.reshape(B, Hp, Wp * Cin)
    taps = jnp.concatenate([x2[:, kh:kh + H, :] for kh in range(KH)], axis=-1)  # (B,H,KH*WCIN)

    BBLK = _choose_bblk(B, H)
    pad_b = (-B) % BBLK                                      # pad batch to a BBLK multiple
    Bp = B + pad_b
    x_in = jnp.pad(taps, ((0, pad_b), (0, 0), (0, KPAD - KH * WCIN))).astype(jnp.bfloat16)
    nblk = Bp // BBLK
    M = BBLK * H                                             # stacked matmul M per step

    def kernel(x_ref, w_ref, cb_ref, wh_ref, bh_ref, out_ref):
        # One big stem matmul for all BBLK images: (BBLK*H, KPAD) x (KPAD, WC), bf16->f32.
        xm = x_ref[...].reshape(M, KPAD)
        acc = jnp.dot(xm, w_ref[...], preferred_element_type=jnp.float32)   # (M, WC) f32
        y = jnp.maximum(acc + cb_ref[...], 0.0)              # conv bias + ReLU (f32)
        # Sum over h (1/(H*W) is folded into the head weight).
        pooled = jnp.sum(y.reshape(BBLK, H, WC), axis=1)     # (BBLK, WC) f32
        # Fused head: avg-pool over w + BN + Linear, all folded into one f32 matmul.
        out_ref[...] = jnp.dot(pooled, wh_ref[...],
                               preferred_element_type=jnp.float32) + bh_ref[...]

    cost = pl.CostEstimate(
        flops=2 * Bp * (H * KPAD * WC + WC * DP),
        transcendentals=0,
        bytes_accessed=(x_in.size * 2 + folded["w_comb"].size * 2
                        + (folded["cb_tiled"].size + folded["whead_tiled"].size
                           + folded["bhead"].size) * 4 + Bp * DP * 4),
    )

    out_pad = pl.pallas_call(
        kernel,
        out_shape=jax.ShapeDtypeStruct((Bp, DP), jnp.float32),
        grid=(nblk,),
        in_specs=[
            pl.BlockSpec((BBLK, H, KPAD), lambda i: (i, 0, 0)),   # kh-stacked images (bf16)
            pl.BlockSpec((KPAD, WC), lambda i: (0, 0)),           # folded conv weight (bf16)
            pl.BlockSpec((1, WC), lambda i: (0, 0)),              # tiled conv bias (f32)
            pl.BlockSpec((WC, DP), lambda i: (0, 0)),             # folded head weight (f32)
            pl.BlockSpec((1, DP), lambda i: (0, 0)),              # folded head bias (f32)
        ],
        out_specs=pl.BlockSpec((BBLK, DP), lambda i: (i, 0)),     # lane-dense (x, 128)
        compiler_params=pltpu.CompilerParams(
            dimension_semantics=("parallel",),                    # shard batch across TCs (v7x)
            vmem_limit_bytes=32 * 1024 * 1024,                    # safe on v5e/v6e/v7x
        ),
        cost_estimate=cost,
    )(x_in, folded["w_comb"], folded["cb_tiled"], folded["whead_tiled"], folded["bhead"])

    # output_scale==1.0 -> no scaling; extra_head_dim==0 -> no extra head; normalizer=None.
    return out_pad[:B, :folded["dout"]]


# --------------------------------- reference ------------------------------------

def reference_forward(images_nchw, params):
    """Pure-JAX f32 reference mirroring the module semantics."""
    x = jnp.transpose(images_nchw, (0, 2, 3, 1)).astype(jnp.float32)
    B, H, W, Cin = x.shape
    xp = jnp.pad(x, ((0, 0), (1, 1), (1, 1), (0, 0)))
    Cstem = params["conv_w"].shape[-1]
    y = jnp.zeros((B, H, W, Cstem), jnp.float32)
    for kh in range(3):
        for kw in range(3):
            y = y + jnp.einsum("bhwc,co->bhwo",
                               xp[:, kh:kh + H, kw:kw + W, :],
                               params["conv_w"][kh, kw])
    y = jnp.maximum(y + params["conv_b"], 0.0)               # conv bias + ReLU
    pooled = jnp.mean(y, axis=(1, 2))                        # AdaptiveAvgPool2d((1,1)) + flatten
    s = params["bn_gamma"] * jax.lax.rsqrt(params["bn_var"] + 1e-5)
    x_bn = (pooled - params["bn_mean"]) * s + params["bn_beta"]
    return x_bn @ params["lin_w"] + params["lin_b"]


# ----------------------------------- main ----------------------------------------

if __name__ == "__main__":
    B, Cin, H, W = 16, 3, 16, 16
    Cstem, out_features = 32, 16                             # extra_head_dim = 0

    key = jax.random.PRNGKey(0)
    k_img, k_cw, k_cb, k_g, k_b, k_m, k_v, k_lw = jax.random.split(key, 8)

    params = {
        "conv_w": jax.random.normal(k_cw, (3, 3, Cin, Cstem), jnp.float32) * 0.1,
        "conv_b": jax.random.normal(k_cb, (Cstem,), jnp.float32) * 0.01,
        # BatchNorm1d eval-mode parameters / running stats.
        "bn_gamma": 1.0 + 0.1 * jax.random.normal(k_g, (Cstem,), jnp.float32),
        "bn_beta": 0.1 * jax.random.normal(k_b, (Cstem,), jnp.float32),
        "bn_mean": 0.05 * jax.random.normal(k_m, (Cstem,), jnp.float32),
        "bn_var": jax.random.uniform(k_v, (Cstem,), jnp.float32, 0.5, 1.5),
        "lin_w": jax.random.normal(k_lw, (Cstem, out_features), jnp.float32) * 0.1,
        "lin_b": jnp.zeros((out_features,), jnp.float32),    # init.constant_(bias, 0)
    }

    images = jax.random.normal(k_img, (B, Cin, H, W), jnp.float32)

    folded = fold_params(params, H, W)
    out = jax.block_until_ready(cnn_embedder_forward(images, folded))
    ref = reference_forward(images, params)

    assert out.shape == (B, out_features)
    assert out.dtype == jnp.float32
    max_err = float(jnp.max(jnp.abs(out - ref)))
    # Tolerance relaxed vs pure-f32 because the stem matmul runs in bf16 (f32 accumulation).
    assert jnp.allclose(out, ref, atol=2e-2, rtol=2e-2), f"mismatch vs reference (max abs err {max_err})"
    print("KERNEL_OK")
</pallas_src>

<mosaic_0001>
module attributes {stable_mosaic.version = 11 : i64} {
  func.func @kernel(%arg0: i32, %arg1: memref<8x16x256xbf16, #tpu.memory_space<vmem>>, %arg2: memref<256x512xbf16, #tpu.memory_space<vmem>>, %arg3: memref<1x512xf32, #tpu.memory_space<vmem>>, %arg4: memref<512x128xf32, #tpu.memory_space<vmem>>, %arg5: memref<1x128xf32, #tpu.memory_space<vmem>>, %arg6: memref<8x128xf32, #tpu.memory_space<vmem>>) attributes {dimension_semantics = [#tpu.dimension_semantics<parallel>], iteration_bounds = array<i64: 2>, scalar_prefetch = 0 : i64, scratch_operands = 0 : i64, tpu.core_type = #tpu.core_type<tc>, window_params = [{transform_indices = @transform_0, window_bounds = array<i64: 8, 16, 256>}, {pipeline_mode = #tpu.pipeline_mode<synchronous>, transform_indices = @transform_1, window_bounds = array<i64: 256, 512>}, {pipeline_mode = #tpu.pipeline_mode<synchronous>, transform_indices = @transform_2, window_bounds = array<i64: 1, 512>}, {pipeline_mode = #tpu.pipeline_mode<synchronous>, transform_indices = @transform_3, window_bounds = array<i64: 512, 128>}, {pipeline_mode = #tpu.pipeline_mode<synchronous>, transform_indices = @transform_4, window_bounds = array<i64: 1, 128>}, {transform_indices = @transform_5, window_bounds = array<i64: 8, 128>}]} {
    %c0 = arith.constant 0 : index
    %c0_0 = arith.constant 0 : index
    %c0_1 = arith.constant 0 : index
    %0 = vector.load %arg1[%c0, %c0_0, %c0_1] : memref<8x16x256xbf16, #tpu.memory_space<vmem>>, vector<8x16x256xbf16>
    %1 = vector.shape_cast %0 : vector<8x16x256xbf16> to vector<128x256xbf16>
    %c0_2 = arith.constant 0 : index
    %c0_3 = arith.constant 0 : index
    %2 = vector.load %arg2[%c0_2, %c0_3] : memref<256x512xbf16, #tpu.memory_space<vmem>>, vector<256x512xbf16>
    %cst = arith.constant dense<0.000000e+00> : vector<128x512xf32>
    %3 = tpu.matmul %1, %2, %cst {dimension_numbers = #tpu.dot_dimension_numbers<[1], [0], [0], [1], [0, 0, 1, 1], [], []>} : vector<128x256xbf16>, vector<256x512xbf16>, vector<128x512xf32> -> vector<128x512xf32>
    %c0_4 = arith.constant 0 : index
    %c0_5 = arith.constant 0 : index
    %4 = vector.load %arg3[%c0_4, %c0_5] : memref<1x512xf32, #tpu.memory_space<vmem>>, vector<1x512xf32>
    %5 = vector.broadcast %4 : vector<1x512xf32> to vector<128x512xf32>
    %6 = arith.addf %3, %5 : vector<128x512xf32>
    %cst_6 = arith.constant 0.000000e+00 : f32
    %7 = vector.broadcast %cst_6 : f32 to vector<128x512xf32>
    %8 = arith.maximumf %6, %7 : vector<128x512xf32>
    %9 = vector.shape_cast %8 : vector<128x512xf32> to vector<8x16x512xf32>
    %cst_7 = arith.constant dense<0.000000e+00> : vector<8x512xf32>
    %10 = vector.multi_reduction <add>, %9, %cst_7 [1] : vector<8x16x512xf32> to vector<8x512xf32>
    %c0_8 = arith.constant 0 : index
    %c0_9 = arith.constant 0 : index
    %11 = vector.load %arg4[%c0_8, %c0_9] : memref<512x128xf32, #tpu.memory_space<vmem>>, vector<512x128xf32>
    %cst_10 = arith.constant dense<0.000000e+00> : vector<8x128xf32>
    %12 = tpu.matmul %10, %11, %cst_10 {dimension_numbers = #tpu.dot_dimension_numbers<[1], [0], [0], [1], [0, 0, 1, 1], [], []>} : vector<8x512xf32>, vector<512x128xf32>, vector<8x128xf32> -> vector<8x128xf32>
    %c0_11 = arith.constant 0 : index
    %c0_12 = arith.constant 0 : index
    %13 = vector.load %arg5[%c0_11, %c0_12] : memref<1x128xf32, #tpu.memory_space<vmem>>, vector<1x128xf32>
    %14 = vector.broadcast %13 : vector<1x128xf32> to vector<8x128xf32>
    %15 = arith.addf %12, %14 : vector<8x128xf32>
    %c0_13 = arith.constant 0 : index
    %c0_14 = arith.constant 0 : index
    %16 = vector.load %arg6[%c0_13, %c0_14] : memref<8x128xf32, #tpu.memory_space<vmem>>, vector<8x128xf32>
    tpu.vector_store %arg6[%c0_13, %c0_14], %15 {strides = array<i32>} : memref<8x128xf32, #tpu.memory_space<vmem>>, vector<8x128xf32>,
    return
  }
  func.func @transform_0(%arg0: i32) -> (i32, i32, i32) {
    %c0_i32 = arith.constant 0 : i32
    %c0_i32_0 = arith.constant 0 : i32
    %c0_i32_1 = arith.constant 0 : i32
    return %arg0, %c0_i32, %c0_i32_0 : i32, i32, i32
  }
  func.func @transform_1(%arg0: i32) -> (i32, i32) {
    %c0_i32 = arith.constant 0 : i32
    %c0_i32_0 = arith.constant 0 : i32
    %c0_i32_1 = arith.constant 0 : i32
    return %c0_i32, %c0_i32_0 : i32, i32
  }
  func.func @transform_2(%arg0: i32) -> (i32, i32) {
    %c0_i32 = arith.constant 0 : i32
    %c0_i32_0 = arith.constant 0 : i32
    %c0_i32_1 = arith.constant 0 : i32
    return %c0_i32, %c0_i32_0 : i32, i32
  }
  func.func @transform_3(%arg0: i32) -> (i32, i32) {
    %c0_i32 = arith.constant 0 : i32
    %c0_i32_0 = arith.constant 0 : i32
    %c0_i32_1 = arith.constant 0 : i32
    return %c0_i32, %c0_i32_0 : i32, i32
  }
  func.func @transform_4(%arg0: i32) -> (i32, i32) {
    %c0_i32 = arith.constant 0 : i32
    %c0_i32_0 = arith.constant 0 : i32
    %c0_i32_1 = arith.constant 0 : i32
    return %c0_i32, %c0_i32_0 : i32, i32
  }
  func.func @transform_5(%arg0: i32) -> (i32, i32) {
    %c0_i32 = arith.constant 0 : i32
    %c0_i32_0 = arith.constant 0 : i32
    return %arg0, %c0_i32 : i32, i32
  }
}

</mosaic_0001>

<bundles_post_ra>
// kernel: tpu_custom_call.1
= control target key start
LH: loop header
LB: loop body
LE: loop exit
PB: predicated region body
PF: predicated region fallthrough
CT: control target
= control target key end

     0   :  { %10 = vsyncpa [#allocation3], 0  ;;  %s2986_s0 = inlined_call_operand.hbm [shape: bf16[16,16,256], index: 0, kind: input, shape index: {}]   ;;  %s2987_s1 = inlined_call_operand.hbm [shape: bf16[256,512], index: 1, kind: input, shape index: {}]   ;;  %s2988_s2 = inlined_call_operand.hbm [shape: f32[1,512], index: 2, kind: input, shape index: {}]   ;;  %s2989_s3 = inlined_call_operand.hbm [shape: f32[512,128], index: 3, kind: input, shape index: {}]   ;;  %s2990_s4 = inlined_call_operand.vmem [shape: f32[1,128], index: 4, kind: input, shape index: {}]   ;;  %s2991_s5 = inlined_call_operand.hbm [shape: f32[16,128], index: 5, kind: output, shape index: {}]  }
   0x1   :  { %12 = vsyncpa [#allocation3 + $0x1], 0 }
   0x2   :  { %13 = vsyncpa [#allocation6], 0 }
   0x3   :  { %14 = vsyncpa [#allocation9], 0 }
   0x4   :  { %15 = vsyncpa [#allocation4], 0 }
   0x5   :  { %17 = vsyncpa [#allocation4 + $0x1], 0  ;;  %s2537_s18 = smov 0   ;;  %s2539_s19 = smov 0  }
   0x6   :  { %s2541_s20 = smov 0   ;;  %s2543_s21 = smov 0  }
   0x7 LB: > { %s2558_s22 = sadd.s32 4294967295, %s2498_s21   ;;  %s1800_s23 = sadd.s32 4294967294, %s2498_s21   ;;  %s2498_s21 = sphi %s2543_s21, %s3004_s21   ;;  %s2494_s20 = sphi %s2541_s20, %s3003_s20   ;;  %s2490_s19 = sphi %s2539_s19, %s3002_s19   ;;  %s2486_s18 = sphi %s2537_s18, %s3001_s18  }
   0x8   : > { %p43_p0 = scmp.ne.s32.totalorder %s2490_s19, %s2486_s18  ;;  %p44_p1 = scmp.eq.s32.totalorder %s2558_s22, 0 }
   0x9   : > { %p151_p2 = scmp.eq.s32.totalorder %s2558_s22, 1  ;;  %p157_p3 = scmp.eq.s32.totalorder %s1800_s23, 1 }
   0xa   : > { %p2567_p4 = por %p44_p1, %p43_p0  ;;  %p1801_p5 = scmp.ge.s32.totalorder %s2498_s21, 1 }
   0xb   : > { %p2572_p6 = por %p157_p3, %p43_p0  ;;  %p164_p7 = scmp.lt.s32.totalorder %s2498_s21, 3 }
   0xc   : > { %s175_s28 = sshll.u32 %s2987_s1, 4  ;;  %s2500_s30 = smov [#allocation5]   ;;  %s176_s28 = int_to_ptr.hbm [resolvable:$true] %s175_s28 }
   0xd   : > { %p2580_p8 = pnand %p1801_p5, %p164_p7  ;;  %s177_s6 = sshll.u32 %s2500_s30, 4  ;;  %s178_s6 = int_to_ptr.vmem [resolvable:$true] %s177_s6 }
   0xe   : > { %s190_s10 = sshll.u32 %s2988_s2, 4  ;;  %s2501_s11 = smov 256   ;;  %s191_s10 = int_to_ptr.hbm [resolvable:$true] %s190_s10 }
   0xf   : > { %p2238_p9 = pneg %p2580_p8  ;;  %s2502_s12 = smov 16  }
  0x10   : > { %s2503_s13 = smov [#allocation7]   ;;  %s201_s17 = sshll.u32 %s2989_s3, 4  ;;  %s202_s17 = int_to_ptr.hbm [resolvable:$true] %s201_s17 }
  0x11   : > { %p2588_p10 = pnand %p2238_p9, %p44_p1  ;;  %s192_s14 = sshll.u32 %s2503_s13, 4  ;;  %s193_s14 = int_to_ptr.vmem [resolvable:$true] %s192_s14 }
  0x12   : > { %s2504_s23 = smov [#allocation8]   ;;  %s2992_s27 = smov 128  }
  0x13   : > { %2241 = dma.hbm_to_vmem [thread:$0]  (!%p2588_p10), %s176_s28, 8192, %s178_s6, [#allocation6], %s2501_s11, %s2501_s11, %s2502_s12  }
  0x14   : > { %2244 = dma.hbm_to_vmem [thread:$0]  (!%p2588_p10), %s191_s10, 64, %s193_s14, [#allocation6]  }
  0x15   : > { %s203_s26 = sshll.u32 %s2504_s23, 4  ;;  %s2506_s28 = smov 8   ;;  %s204_s26 = int_to_ptr.vmem [resolvable:$true] %s203_s26 }
  0x16   : > { %2247 = dma.hbm_to_vmem [thread:$0]  (!%p2588_p10), %s202_s17, 8192, %s204_s26, [#allocation9], %s2992_s27, %s2992_s27, %s2506_s28  }
  0x17   : > { %s2609_s30 = sadd.s32 1, %s2498_s21   ;;  %s30_s8 = sadd.s32 1, %s2494_s20 }
  0x18   : > { %s27_s6 = ssub.s32 %s2498_s21, %s2609_s30  ;;  %p37_p13 = scmp.ne.s32.totalorder %s2494_s20, %s2490_s19 }
  0x19   : > { %p28_p12 = scmp.eq.s32.totalorder %s27_s6, 0  ;;  %p38_p0 = scmp.eq.s32.totalorder %s2498_s21, 0 }
  0x1a   : > { %p2622_p3 = por %p151_p2, %p37_p13  ;;  %p2259_p5 = scmp.lt.s32.totalorder %s2498_s21, 2 }
  0x1b   : > { %s2618_s9 = scalar_select %p28_p12, %s2494_s20, %s30_s8  }
  0x1c   : > { %s220_s7 = sand.u32 1, %s2494_s20   ;;  %s2141_s11 = sshll.u32 %s2498_s21, 7 }
  0x1d   : > { %p39_p7 = por %p38_p0, %p37_p13  ;;  %s1806_s12 = sshll.u32 %s220_s7, 7 }
  0x1e   : > { %s230_s15 = scalar_lea.hbm %s2986_s0, %s2141_s11  ;;  %s224_s17 = scalar_lea.vmem [#allocation2], %s1806_s12 }
  0x1f   : > { %s231_s16 = sshll.u32 %s230_s15, 4  ;;  %s233_s23 = sshll.u32 %s224_s17, 4  ;;  %s232_s16 = int_to_ptr.hbm [resolvable:$true] %s231_s16  ;;  %s234_s23 = int_to_ptr.vmem [resolvable:$true] %s233_s23 }
  0x20   : > { %p2632_p9 = pnand %p2259_p5, %p39_p7  ;;  %s221_s6 = scalar_lea.sflag [#allocation3], %s220_s7 }
  0x21   : > { %s2394_s8 = sshra.s32 %s232_s16, 4  ;;  %s2401_s12 = scalar_lea.hbm %s2986_s0, 256  ;;  %s2395_s8 = int_to_ptr.hbm [resolvable:$true] %s2394_s8 }
  0x22   : > { %s2396_s27 = scalar_lea.hbm %s2395_s8, 128  ;;  %p2398_p10 = pneg %p2632_p9 }
  0x23   : > { %p2397_p2 = scmp.ne.s32.totalorder %s2395_s8, %s2396_s27  ;;  %p2402_p0 = scmp.lt.s32.totalorder %s2395_s8, %s2986_s0 }
  0x24   : > { %p2403_p5 = scmp.lt.s32.totalorder %s2401_s12, %s2396_s27 }
  0x25   : > { %p2399_p12 = pnand %p2398_p10, %p2397_p2 }
  0x26   : > { %p2404_p7 = por %p2403_p5, %p2402_p0 }
  0x27   : > { %p2400_p13 = pneg %p2399_p12 }
  0x29   : > { %p2405_p11 = pnand %p2404_p7, %p2400_p13 }
  0x2b   : > { %2408 = shalt.err (!%p2405_p11)
}
  0x2c   : > { %s2999_s7 = smov 128   ;;  %245 = sbr.rel (%p2580_p8) target bundleno = 628 (0x274), region = 40 }
  0x2d   : > { %2251 = dma.hbm_to_vmem [thread:$0]  (!%p2632_p9), %s232_s16, 2048, %s234_s23, %s221_s6, %s2999_s7, %s2999_s7, %s2506_s28  }
  0x2e   : > { %s2652_s17 = sand.u32 (!%p2580_p8), 1, %s2490_s19  }
  0x2f   : > { %s1811_s8 = sshll.u32 (!%p2580_p8), %s2652_s17, 7  ;;  %s248_s27 = scalar_lea.sflag (!%p2580_p8), [#allocation3], %s2652_s17 }
  0x30   : > { %s2656_s11 = scalar_lea.vmem (!%p2580_p8), [#allocation2], %s1811_s8 }
  0x31   : > { %2469 = dma.done.wait (%p2567_p4), %s248_s27, 2048  }
  0x32   : > { %2471 = vsyncadd (%p2567_p4), %s248_s27, 4294965248 }
  0x33   : > { %2473 = dma.done.wait (%p44_p1), [#allocation6], 8256  }
  0x34   : > { %2475 = vsyncadd (%p44_p1), [#allocation6], 4294959040 }
  0x35   : > { %2477 = dma.done.wait (%p44_p1), [#allocation9], 8192  }
  0x36   : > { %2479 = vsyncadd (%p44_p1), [#allocation9], 4294959104  ;;  %v1994_v0 = vld [vmem:[#allocation5 + $0xe0] sm:$0xf]  ;;  %v2188_v1 = vld [vmem:[#allocation5 + $0xec] sm:$0xf0] }
  0x37   : > { %v2122_v2 = vld [vmem:[#allocation5 + $0x1e0] sm:$0xf]  ;;  %v1995_v3 = vor.u32 %v2188_v1, %v1994_v0  ;;  %v2220_v4 = vld [vmem:[#allocation5 + $0x1ec] sm:$0xf0]  ;;  %v2186_v5 = vld [vmem:[#allocation5 + $0xe4] sm:$0xf] }
  0x38   : > { %v1996_v6 = vld [vmem:[#allocation5 + $0xf0] sm:$0xf0]  ;;  %v2123_v7 = vor.u32 %v2220_v4, %v2122_v2  ;;  %v2218_v9 = vld [vmem:[#allocation5 + $0x1e4] sm:$0xf]  ;;  %v1978_v11 = vld [vmem:[#allocation5 + $0xc0] sm:$0xf] }
  0x39   : > { %v1999_v8 = vor.u32 %v2186_v5, %v1996_v6  ;;  %v2124_v10 = vld [vmem:[#allocation5 + $0x1f0] sm:$0xf0]  ;;  %785 = vmatpush.bf16.msra.mxu0 %v1995_v3  ;;  %v2184_v13 = vld [vmem:[#allocation5 + $0xcc] sm:$0xf0]  ;;  %v2106_v14 = vld [vmem:[#allocation5 + $0x1c0] sm:$0xf] }
  0x3a   : > { %v2127_v12 = vor.u32 %v2218_v9, %v2124_v10  ;;  %v2216_v15 = vld [vmem:[#allocation5 + $0x1cc] sm:$0xf0]  ;;  %834 = vmatpush.bf16.msra.mxu1 %v2123_v7  ;;  %v1979_v16 = vor.u32 %v2184_v13, %v1978_v11  ;;  %v2182_v18 = vld [vmem:[#allocation5 + $0xc4] sm:$0xf]  ;;  %v1980_v19 = vld [vmem:[#allocation5 + $0xd0] sm:$0xf0] }
  0x3b   : > { %883 = vmatpush.bf16.msra.mxu2 %v1999_v8  ;;  %v2107_v17 = vor.u32 %v2216_v15, %v2106_v14  ;;  %v2214_v20 = vld [vmem:[#allocation5 + $0x1c4] sm:$0xf]  ;;  %v1983_v21 = vor.u32 %v2182_v18, %v1980_v19  ;;  %v2108_v22 = vld [vmem:[#allocation5 + $0x1d0] sm:$0xf0]  ;;  %v1962_v23 = vld [vmem:[#allocation5 + $0xa0] sm:$0xf] }
  0x3c   : > { %932 = vmatpush.bf16.msra.mxu3 %v2127_v12  ;;  %v2180_v24 = vld [vmem:[#allocation5 + $0xac] sm:$0xf0]  ;;  %v2111_v25 = vor.u32 %v2214_v20, %v2108_v22  ;;  %v2090_v26 = vld [vmem:[#allocation5 + $0x1a0] sm:$0xf]  ;;  %v2178_v28 = vld [vmem:[#allocation5 + $0xa4] sm:$0xf] }
  0x3d   : > { %v2212_v27 = vld [vmem:[#allocation5 + $0x1ac] sm:$0xf0]  ;;  %786 = vmatpush.bf16.msra.mxu0 %v1979_v16  ;;  %v1963_v29 = vor.u32 %v2180_v24, %v1962_v23  ;;  %v1964_v30 = vld [vmem:[#allocation5 + $0xb0] sm:$0xf0]  ;;  %v2210_v31 = vld [vmem:[#allocation5 + $0x1a4] sm:$0xf] }
  0x3e   : > { %v2092_v32 = vld [vmem:[#allocation5 + $0x1b0] sm:$0xf0]  ;;  %835 = vmatpush.bf16.msra.mxu1 %v2107_v17  ;;  %v2091_v33 = vor.u32 %v2212_v27, %v2090_v26  ;;  %v1967_v34 = vor.u32 %v2178_v28, %v1964_v30  ;;  %v1946_v35 = vld [vmem:[#allocation5 + $0x80] sm:$0xf]  ;;  %v2176_v36 = vld [vmem:[#allocation5 + $0x8c] sm:$0xf0] }
  0x3f   : > { %884 = vmatpush.bf16.msra.mxu2 %v1983_v21  ;;  %v2074_v37 = vld [vmem:[#allocation5 + $0x180] sm:$0xf]  ;;  %v2095_v38 = vor.u32 %v2210_v31, %v2092_v32  ;;  %v2208_v39 = vld [vmem:[#allocation5 + $0x18c] sm:$0xf0]  ;;  %v2174_v40 = vld [vmem:[#allocation5 + $0x84] sm:$0xf]  ;;  %v1947_v44 = vor.u32 %v2176_v36, %v1946_v35 }
  0x40   : > { %933 = vmatpush.bf16.msra.mxu3 %v2111_v25  ;;  %v1948_v41 = vld [vmem:[#allocation5 + $0x90] sm:$0xf0]  ;;  %v2206_v42 = vld [vmem:[#allocation5 + $0x184] sm:$0xf]  ;;  %v2075_v45 = vor.u32 %v2208_v39, %v2074_v37  ;;  %v1930_v47 = vld [vmem:[#allocation5 + $0x60] sm:$0xf] }
  0x41   : > { %v2076_v43 = vld [vmem:[#allocation5 + $0x190] sm:$0xf0]  ;;  %787 = vmatpush.bf16.msra.mxu0 %v1963_v29  ;;  %v1951_v46 = vor.u32 %v2174_v40, %v1948_v41  ;;  %v2172_v48 = vld [vmem:[#allocation5 + $0x6c] sm:$0xf0]  ;;  %v2058_v49 = vld [vmem:[#allocation5 + $0x160] sm:$0xf] }
  0x42   : > { %836 = vmatpush.bf16.msra.mxu1 %v2091_v33  ;;  %v2079_v50 = vor.u32 %v2206_v42, %v2076_v43  ;;  %v2204_v51 = vld [vmem:[#allocation5 + $0x16c] sm:$0xf0]  ;;  %v2170_v52 = vld [vmem:[#allocation5 + $0x64] sm:$0xf]  ;;  %v1932_v53 = vld [vmem:[#allocation5 + $0x70] sm:$0xf0]  ;;  %v1931_v56 = vor.u32 %v2172_v48, %v1930_v47 }
  0x43   : > { %885 = vmatpush.bf16.msra.mxu2 %v1967_v34  ;;  %v2202_v54 = vld [vmem:[#allocation5 + $0x164] sm:$0xf]  ;;  %v2060_v55 = vld [vmem:[#allocation5 + $0x170] sm:$0xf0]  ;;  %v2059_v57 = vor.u32 %v2204_v51, %v2058_v49  ;;  %v1935_v58 = vor.u32 %v2170_v52, %v1932_v53  ;;  %v1914_v59 = vld [vmem:[#allocation5 + $0x40] sm:$0xf] }
  0x44   : > { %934 = vmatpush.bf16.msra.mxu3 %v2095_v38  ;;  %v2168_v60 = vld [vmem:[#allocation5 + $0x4c] sm:$0xf0]  ;;  %v2042_v61 = vld [vmem:[#allocation5 + $0x140] sm:$0xf]  ;;  %v2063_v62 = vor.u32 %v2202_v54, %v2060_v55  ;;  %v2166_v0 = vld [vmem:[#allocation5 + $0x44] sm:$0xf] }
  0x45   : > { %788 = vmatpush.bf16.msra.mxu0 %v1947_v44  ;;  %v2200_v63 = vld [vmem:[#allocation5 + $0x14c] sm:$0xf0]  ;;  %v1916_v1 = vld [vmem:[#allocation5 + $0x50] sm:$0xf0]  ;;  %v2198_v2 = vld [vmem:[#allocation5 + $0x144] sm:$0xf]  ;;  %v1915_v4 = vor.u32 %v2168_v60, %v1914_v59 }
  0x46   : > { %837 = vmatpush.bf16.msra.mxu1 %v2075_v45  ;;  %v2044_v3 = vld [vmem:[#allocation5 + $0x150] sm:$0xf0]  ;;  %v2043_v5 = vor.u32 %v2200_v63, %v2042_v61  ;;  %v1919_v6 = vor.u32 %v2166_v0, %v1916_v1  ;;  %v1898_v7 = vld [vmem:[#allocation5 + $0x20] sm:$0xf]  ;;  %v2164_v8 = vld [vmem:[#allocation5 + $0x2c] sm:$0xf0] }
  0x47   : > { %886 = vmatpush.bf16.msra.mxu2 %v1951_v46  ;;  %v2026_v9 = vld [vmem:[#allocation5 + $0x120] sm:$0xf]  ;;  %v2047_v10 = vor.u32 %v2198_v2, %v2044_v3  ;;  %v2196_v11 = vld [vmem:[#allocation5 + $0x12c] sm:$0xf0]  ;;  %v2162_v12 = vld [vmem:[#allocation5 + $0x24] sm:$0xf]  ;;  %v1899_v16 = vor.u32 %v2164_v8, %v1898_v7 }
  0x48   : > { %935 = vmatpush.bf16.msra.mxu3 %v2079_v50  ;;  %v1900_v13 = vld [vmem:[#allocation5 + $0x30] sm:$0xf0]  ;;  %v2194_v14 = vld [vmem:[#allocation5 + $0x124] sm:$0xf]  ;;  %v1882_v17 = vld [vmem:[#allocation5] sm:$0xf]  ;;  %v2027_v19 = vor.u32 %v2196_v11, %v2026_v9 }
  0x49   : > { %789 = vmatpush.bf16.msra.mxu0 %v1931_v56  ;;  %v2028_v15 = vld [vmem:[#allocation5 + $0x130] sm:$0xf0]  ;;  %v2160_v18 = vld [vmem:[#allocation5 + $0xc] sm:$0xf0]  ;;  %v1903_v20 = vor.u32 %v2162_v12, %v1900_v13  ;;  %v2010_v21 = vld [vmem:[#allocation5 + $0x100] sm:$0xf] }
  0x4a   : > { %838 = vmatpush.bf16.msra.mxu1 %v2059_v57  ;;  %v2192_v22 = vld [vmem:[#allocation5 + $0x10c] sm:$0xf0]  ;;  %v2158_v23 = vld [vmem:[#allocation5 + $0x4] sm:$0xf]  ;;  %v2031_v24 = vor.u32 %v2194_v14, %v2028_v15  ;;  %v1884_v25 = vld [vmem:[#allocation5 + $0x10] sm:$0xf0]  ;;  %v1883_v31 = vor.u32 %v2160_v18, %v1882_v17 }
  0x4b   : > { %887 = vmatpush.bf16.msra.mxu2 %v1935_v58  ;;  %v2190_v26 = vld [vmem:[#allocation5 + $0x104] sm:$0xf]  ;;  %v2012_v27 = vld [vmem:[#allocation5 + $0x110] sm:$0xf0]  ;;  %v1818_v28 = vld [vmem:[%s2656_s11] sm:$0xf]  ;;  %v2011_v35 = vor.u32 %v2192_v22, %v2010_v21  ;;  %v1887_v36 = vor.u32 %v2158_v23, %v1884_v25 }
  0x4c   : > { %936 = vmatpush.bf16.msra.mxu3 %v2063_v62  ;;  %v2187_v29 = vld [vmem:[#allocation5 + $0xec] sm:$0xf]  ;;  %v2004_v30 = vld [vmem:[#allocation5 + $0xf8] sm:$0xf0]  ;;  %v2143_v32 = vld [vmem:[%s2656_s11 + $0x4] sm:$0xf0]  ;;  %v2015_v40 = vor.u32 %v2190_v26, %v2012_v27 }
  0x4d   : > { %790 = vmatpush.bf16.msra.mxu0 %v1915_v4  ;;  %v2219_v33 = vld [vmem:[#allocation5 + $0x1ec] sm:$0xf]  ;;  %v2132_v34 = vld [vmem:[#allocation5 + $0x1f8] sm:$0xf0]  ;;  %v2142_v37 = vld [vmem:[%s2656_s11 + $0x4] sm:$0xf]  ;;  %v2007_v41 = vor.u32 %v2187_v29, %v2004_v30  ;;  %v2674_v45 = vor.u32 %v2143_v32, %v1818_v28 }
  0x4e   : > { %839 = vmatpush.bf16.msra.mxu1 %v2043_v5  ;;  %v1820_v38 = vld [vmem:[%s2656_s11 + $0x8] sm:$0xf0]  ;;  %v2002_v39 = vld [vmem:[#allocation5 + $0xe8] sm:$0xf]  ;;  %v2189_v42 = vld [vmem:[#allocation5 + $0xf4] sm:$0xf0]  ;;  %v2135_v46 = vor.u32 %v2219_v33, %v2132_v34 }
  0x4f   : > { %888 = vmatpush.bf16.msra.mxu2 %v1919_v6  ;;  %v2130_v43 = vld [vmem:[#allocation5 + $0x1e8] sm:$0xf]  ;;  %v2221_v44 = vld [vmem:[#allocation5 + $0x1f4] sm:$0xf0]  ;;  %v2183_v47 = vld [vmem:[#allocation5 + $0xcc] sm:$0xf]  ;;  %v2676_v49 = vor.u32 %v2142_v37, %v1820_v38  ;;  %v2003_v52 = vor.u32 %v2189_v42, %v2002_v39 }
  0x50   : > { %937 = vmatpush.bf16.msra.mxu3 %v2047_v10  ;;  %v1988_v48 = vld [vmem:[#allocation5 + $0xd8] sm:$0xf0]  ;;  %v2215_v50 = vld [vmem:[#allocation5 + $0x1cc] sm:$0xf]  ;;  %v2131_v53 = vor.u32 %v2221_v44, %v2130_v43  ;;  %v1986_v55 = vld [vmem:[#allocation5 + $0xc8] sm:$0xf] }
  0x51   : > { %791 = vmatpush.bf16.msra.mxu0 %v1899_v16  ;;  %v2116_v51 = vld [vmem:[#allocation5 + $0x1d8] sm:$0xf0]  ;;  %v1991_v54 = vor.u32 %v2183_v47, %v1988_v48  ;;  %v2185_v56 = vld [vmem:[#allocation5 + $0xd4] sm:$0xf0]  ;;  %v2114_v58 = vld [vmem:[#allocation5 + $0x1c8] sm:$0xf] }
  0x52   : > { %840 = vmatpush.bf16.msra.mxu1 %v2027_v19  ;;  %v2119_v57 = vor.u32 %v2215_v50, %v2116_v51  ;;  %v2217_v59 = vld [vmem:[#allocation5 + $0x1d4] sm:$0xf0]  ;;  %v1987_v60 = vor.u32 %v2185_v56, %v1986_v55  ;;  %v2179_v61 = vld [vmem:[#allocation5 + $0xac] sm:$0xf]  ;;  %v1972_v62 = vld [vmem:[#allocation5 + $0xb8] sm:$0xf0] }
  0x53   : > { %889 = vmatpush.bf16.msra.mxu2 %v1903_v20  ;;  %v2211_v63 = vld [vmem:[#allocation5 + $0x1ac] sm:$0xf]  ;;  %v2115_v0 = vor.u32 %v2217_v59, %v2114_v58  ;;  %v1975_v1 = vor.u32 %v2179_v61, %v1972_v62  ;;  %v2100_v2 = vld [vmem:[#allocation5 + $0x1b8] sm:$0xf0]  ;;  %v1970_v3 = vld [vmem:[#allocation5 + $0xa8] sm:$0xf] }
  0x54   : > { %938 = vmatpush.bf16.msra.mxu3 %v2031_v24  ;;  %v2181_v4 = vld [vmem:[#allocation5 + $0xb4] sm:$0xf0]  ;;  %v2103_v5 = vor.u32 %v2211_v63, %v2100_v2  ;;  %v2098_v6 = vld [vmem:[#allocation5 + $0x1a8] sm:$0xf]  ;;  %v1826_v10 = vld [vmem:[%s2656_s11 + $0x10] sm:$0xf] }
  0x55   : > { %792 = vmatpush.bf16.msra.mxu0 %v1883_v31  ;;  %v2213_v7 = vld [vmem:[#allocation5 + $0x1b4] sm:$0xf0]  ;;  %v1971_v8 = vor.u32 %v2181_v4, %v1970_v3  ;;  %v2144_v12 = vld [vmem:[%s2656_s11 + $0x14] sm:$0xf]  ;;  %v1828_v13 = vld [vmem:[%s2656_s11 + $0x18] sm:$0xf0] }
  0x56   : > { %841 = vmatpush.bf16.msra.mxu1 %v2011_v35  ;;  %v2099_v9 = vor.u32 %v2213_v7, %v2098_v6  ;;  %v2145_v11 = vld [vmem:[%s2656_s11 + $0x14] sm:$0xf0]  ;;  %v2688_v15 = vor.u32 %v2144_v12, %v1828_v13  ;;  %v2175_v16 = vld [vmem:[#allocation5 + $0x8c] sm:$0xf]  ;;  %v1956_v17 = vld [vmem:[#allocation5 + $0x98] sm:$0xf0] }
  0x57   : > { %890 = vmatpush.bf16.msra.mxu2 %v1887_v36  ;;  %v2686_v14 = vor.u32 %v2145_v11, %v1826_v10  ;;  %v2207_v18 = vld [vmem:[#allocation5 + $0x18c] sm:$0xf]  ;;  %v1959_v19 = vor.u32 %v2175_v16, %v1956_v17  ;;  %v2084_v20 = vld [vmem:[#allocation5 + $0x198] sm:$0xf0]  ;;  %v1954_v21 = vld [vmem:[#allocation5 + $0x88] sm:$0xf] }
  0x58   : > { %939 = vmatpush.bf16.msra.mxu3 %v2015_v40  ;;  %793 = vmatmul.bf16.vlgmr.msra.gmra.mxu0 %v2674_v45  ;;  %v2177_v22 = vld [vmem:[#allocation5 + $0x94] sm:$0xf0]  ;;  %v2087_v23 = vor.u32 %v2207_v18, %v2084_v20  ;;  %v2082_v25 = vld [vmem:[#allocation5 + $0x188] sm:$0xf]  ;;  %v1834_v28 = vld [vmem:[%s2656_s11 + $0x20] sm:$0xf] }
  0x59   : > { %842 = vmatmul.bf16.vlgmr.msra.gmra.mxu1 %v2676_v49  ;;  %981 = vmatpush.bf16.msrb.mxu0 %v2003_v52  ;;  %v1955_v24 = vor.u32 %v2177_v22, %v1954_v21  ;;  %v2209_v26 = vld [vmem:[#allocation5 + $0x194] sm:$0xf0]  ;;  %v2147_v29 = vld [vmem:[%s2656_s11 + $0x24] sm:$0xf0]  ;;  %v2146_v30 = vld [vmem:[%s2656_s11 + $0x24] sm:$0xf] }
  0x5a   : > { %891 = vmatmul.bf16.vlgmr.msra.gmra.mxu2 %v2674_v45  ;;  %1030 = vmatpush.bf16.msrb.mxu1 %v2131_v53  ;;  %v2083_v27 = vor.u32 %v2209_v26, %v2082_v25  ;;  %v1836_v31 = vld [vmem:[%s2656_s11 + $0x28] sm:$0xf0]  ;;  %v2698_v32 = vor.u32 %v2147_v29, %v1834_v28  ;;  %v1940_v35 = vld [vmem:[#allocation5 + $0x78] sm:$0xf0]  ;;  %v1938_v39 = vld [vmem:[#allocation5 + $0x68] sm:$0xf] }
  0x5b   : > { %1079 = vmatpush.bf16.msrb.mxu2 %v2007_v41  ;;  %940 = vmatmul.bf16.vlgmr.msra.gmra.mxu3 %v2676_v49  ;;  %v2700_v33 = vor.u32 %v2146_v30, %v1836_v31  ;;  %v2171_v34 = vld [vmem:[#allocation5 + $0x6c] sm:$0xf]  ;;  %v2068_v38 = vld [vmem:[#allocation5 + $0x178] sm:$0xf0]  ;;  %v2173_v40 = vld [vmem:[#allocation5 + $0x74] sm:$0xf0] }
  0x5c   : > { %1128 = vmatpush.bf16.msrb.mxu3 %v2135_v46  ;;  %v2203_v36 = vld [vmem:[#allocation5 + $0x16c] sm:$0xf]  ;;  %v1943_v37 = vor.u32 %v2171_v34, %v1940_v35  ;;  %v1939_v42 = vor.u32 %v2173_v40, %v1938_v39  ;;  %v2066_v43 = vld [vmem:[#allocation5 + $0x168] sm:$0xf]  ;;  %v2205_v44 = vld [vmem:[#allocation5 + $0x174] sm:$0xf0] }
  0x5d   : > { %982 = vmatpush.bf16.msrb.mxu0 %v1987_v60  ;;  %v2071_v41 = vor.u32 %v2203_v36, %v2068_v38  ;;  %v2067_v46 = vor.u32 %v2205_v44, %v2066_v43  ;;  %v1842_v47 = vld [vmem:[%s2656_s11 + $0x30] sm:$0xf]  ;;  %v2149_v48 = vld [vmem:[%s2656_s11 + $0x34] sm:$0xf0]  ;;  %v2148_v50 = vld [vmem:[%s2656_s11 + $0x34] sm:$0xf] }
  0x5e   : > { %1031 = vmatpush.bf16.msrb.mxu1 %v2115_v0  ;;  %v1844_v51 = vld [vmem:[%s2656_s11 + $0x38] sm:$0xf0]  ;;  %v2710_v52 = vor.u32 %v2149_v48, %v1842_v47  ;;  %v2199_v56 = vld [vmem:[#allocation5 + $0x14c] sm:$0xf]  ;;  %v1922_v59 = vld [vmem:[#allocation5 + $0x48] sm:$0xf] }
  0x5f   : > { %1080 = vmatpush.bf16.msrb.mxu2 %v1991_v54  ;;  %v2712_v53 = vor.u32 %v2148_v50, %v1844_v51  ;;  %v2167_v54 = vld [vmem:[#allocation5 + $0x4c] sm:$0xf]  ;;  %v1924_v55 = vld [vmem:[#allocation5 + $0x58] sm:$0xf0]  ;;  %v2169_v60 = vld [vmem:[#allocation5 + $0x54] sm:$0xf0] }
  0x60   : > { %1129 = vmatpush.bf16.msrb.mxu3 %v2119_v57  ;;  %v1927_v57 = vor.u32 %v2167_v54, %v1924_v55  ;;  %v2052_v58 = vld [vmem:[#allocation5 + $0x158] sm:$0xf0]  ;;  %v1923_v62 = vor.u32 %v2169_v60, %v1922_v59  ;;  %v2050_v63 = vld [vmem:[#allocation5 + $0x148] sm:$0xf]  ;;  %v2201_v0 = vld [vmem:[#allocation5 + $0x154] sm:$0xf0] }
  0x61   : > { %983 = vmatpush.bf16.msrb.mxu0 %v1971_v8  ;;  %v2055_v61 = vor.u32 %v2199_v56, %v2052_v58  ;;  %v1850_v2 = vld [vmem:[%s2656_s11 + $0x40] sm:$0xf]  ;;  %v2151_v3 = vld [vmem:[%s2656_s11 + $0x44] sm:$0xf0]  ;;  %v2150_v4 = vld [vmem:[%s2656_s11 + $0x44] sm:$0xf] }
  0x62   : > { %1032 = vmatpush.bf16.msrb.mxu1 %v2099_v9  ;;  %v2722_v6 = vor.u32 %v2151_v3, %v1850_v2  ;;  %v2163_v8 = vld [vmem:[#allocation5 + $0x2c] sm:$0xf]  ;;  %v1908_v9 = vld [vmem:[#allocation5 + $0x38] sm:$0xf0]  ;;  %v1906_v13 = vld [vmem:[#allocation5 + $0x28] sm:$0xf] }
  0x63   : > { %1081 = vmatpush.bf16.msrb.mxu2 %v1975_v1  ;;  %v2051_v1 = vor.u32 %v2201_v0, %v2050_v63  ;;  %v2195_v10 = vld [vmem:[#allocation5 + $0x12c] sm:$0xf]  ;;  %v1911_v11 = vor.u32 %v2163_v8, %v1908_v9  ;;  %v2036_v12 = vld [vmem:[#allocation5 + $0x138] sm:$0xf0]  ;;  %v2165_v16 = vld [vmem:[#allocation5 + $0x34] sm:$0xf0] }
  0x64   : > { %1130 = vmatpush.bf16.msrb.mxu3 %v2103_v5  ;;  %v1852_v5 = vld [vmem:[%s2656_s11 + $0x48] sm:$0xf0]  ;;  %v2039_v17 = vor.u32 %v2195_v10, %v2036_v12  ;;  %v1907_v18 = vor.u32 %v2165_v16, %v1906_v13  ;;  %v2197_v20 = vld [vmem:[#allocation5 + $0x134] sm:$0xf0]  ;;  %v1858_v22 = vld [vmem:[%s2656_s11 + $0x50] sm:$0xf] }
  0x65   : > { %984 = vmatpush.bf16.msrb.mxu0 %v1955_v24  ;;  %v2724_v7 = vor.u32 %v2150_v4, %v1852_v5  ;;  %v2152_v24 = vld [vmem:[%s2656_s11 + $0x54] sm:$0xf]  ;;  %v1860_v25 = vld [vmem:[%s2656_s11 + $0x58] sm:$0xf0]  ;;  %v2159_v28 = vld [vmem:[#allocation5 + $0xc] sm:$0xf] }
  0x66   : > { %1033 = vmatpush.bf16.msrb.mxu1 %v2083_v27  ;;  %v2736_v27 = vor.u32 %v2152_v24, %v1860_v25  ;;  %v1892_v29 = vld [vmem:[#allocation5 + $0x18] sm:$0xf0]  ;;  %v2191_v30 = vld [vmem:[#allocation5 + $0x10c] sm:$0xf]  ;;  %v1890_v35 = vld [vmem:[#allocation5 + $0x8] sm:$0xf] }
  0x67   : > { %1082 = vmatpush.bf16.msrb.mxu2 %v1959_v19  ;;  %v2034_v19 = vld [vmem:[#allocation5 + $0x128] sm:$0xf]  ;;  %v1895_v31 = vor.u32 %v2159_v28, %v1892_v29  ;;  %v2020_v34 = vld [vmem:[#allocation5 + $0x118] sm:$0xf0]  ;;  %v2161_v36 = vld [vmem:[#allocation5 + $0x14] sm:$0xf0] }
  0x68   : > { %798 = vmatmul.bf16.gmra.mxu0 %v2686_v14  ;;  %1131 = vmatpush.bf16.msrb.mxu3 %v2087_v23  ;;  %v2035_v21 = vor.u32 %v2197_v20, %v2034_v19  ;;  %v2153_v23 = vld [vmem:[%s2656_s11 + $0x54] sm:$0xf0]  ;;  %v1891_v38 = vor.u32 %v2161_v36, %v1890_v35  ;;  %v2018_v39 = vld [vmem:[#allocation5 + $0x108] sm:$0xf]  ;;  %v2154_v44 = vld [vmem:[%s2656_s11 + $0x64] sm:$0xf] }
  0x69   : > { %847 = vmatmul.bf16.gmra.mxu1 %v2688_v15  ;;  %985 = vmatpush.bf16.msrb.mxu0 %v1939_v42  ;;  %v2734_v26 = vor.u32 %v2153_v23, %v1858_v22  ;;  %v2193_v40 = vld [vmem:[#allocation5 + $0x114] sm:$0xf0]  ;;  %v1866_v42 = vld [vmem:[%s2656_s11 + $0x60] sm:$0xf]  ;;  %v2155_v43 = vld [vmem:[%s2656_s11 + $0x64] sm:$0xf0] }
  0x6a   : > { %896 = vmatmul.bf16.gmra.mxu2 %v2686_v14  ;;  %1034 = vmatpush.bf16.msrb.mxu1 %v2067_v46  ;;  %v1868_v46 = vld [vmem:[%s2656_s11 + $0x68] sm:$0xf0]  ;;  %v2746_v47 = vor.u32 %v2155_v43, %v1866_v42  ;;  %v1874_v50 = vld [vmem:[%s2656_s11 + $0x70] sm:$0xf]  ;;  %v2157_v51 = vld [vmem:[%s2656_s11 + $0x74] sm:$0xf0] }
  0x6b   : > { %945 = vmatmul.bf16.gmra.mxu3 %v2688_v15  ;;  %1083 = vmatpush.bf16.msrb.mxu2 %v1943_v37  ;;  %v2023_v37 = vor.u32 %v2191_v30, %v2020_v34  ;;  %v2748_v48 = vor.u32 %v2154_v44, %v1868_v46  ;;  %v2156_v54 = vld [vmem:[%s2656_s11 + $0x74] sm:$0xf]  ;;  %v1876_v55 = vld [vmem:[%s2656_s11 + $0x78] sm:$0xf0]  ;;  %v2758_v56 = vor.u32 %v2157_v51, %v1874_v50  ;;  %v2766_v58 = vld [vmem:[#allocation7] sm:$0xf] }
  0x6c   : > { %1132 = vmatpush.bf16.msrb.mxu3 %v2071_v41  ;;  %v2019_v41 = vor.u32 %v2193_v40, %v2018_v39  ;;  %v2769_v59 = vperm.slane %v2766_v58, 0  ;;  %v2776_v0 = vperm.slane %v2766_v58, 1  ;;  %vm1565_vm0 = vcmask 1041409   ;;  %s1815_s28 = sshll.u32 %s2652_s17, 3  ;;  %s2137_s16 = sshll.u32 %s2558_s22, 3 }
  0x6d   : > { %986 = vmatpush.bf16.msrb.mxu0 %v1923_v62  ;;  %vm1567_vm1 = vcmask 1042434   ;;  %vm1569_vm2 = vcmask 1043459   ;;  %vm1571_vm3 = vcmask 1044484   ;;  %vm1573_vm4 = vcmask 1045509   ;;  %s1696_s6 = scalar_lea.hbm %s2991_s5, %s2137_s16  ;;  %s293_s13 = scalar_lea.vmem [#allocation10], %s1815_s28 }
  0x6e   : > { %1035 = vmatpush.bf16.msrb.mxu1 %v2051_v1  ;;  %vm1575_vm5 = vcmask 1046534   ;;  %vm1577_vm6 = vcmask 1047559   ;;  %s1698_s12 = sshll.u32 %s293_s13, 4  ;;  %s1700_s14 = sshll.u32 %s1696_s6, 4  ;;  %s1699_s12 = int_to_ptr.vmem [resolvable:$true] %s1698_s12  ;;  %s1701_s14 = int_to_ptr.hbm [resolvable:$true] %s1700_s14 }
  0x6f   : > { %1084 = vmatpush.bf16.msrb.mxu2 %v1927_v57  ;;  %v2760_v57 = vor.u32 %v2156_v54, %v1876_v55  ;;  %s1686_s15 = scalar_lea.sflag [#allocation4], %s2652_s17  ;;  %s2438_s22 = sshra.s32 %s1701_s14, 4  ;;  %s2439_s22 = int_to_ptr.hbm [resolvable:$true] %s2438_s22 }
  0x70   : > { %1133 = vmatpush.bf16.msrb.mxu3 %v2055_v61  ;;  %s2440_s7 = scalar_lea.hbm %s2439_s22, 8  ;;  %s2444_s11 = scalar_lea.hbm %s2991_s5, 16 }
  0x71   : > { %987 = vmatpush.bf16.msrb.mxu0 %v1907_v18  ;;  %p2441_p1 = scmp.ne.s32.totalorder %s2439_s22, %s2440_s7  ;;  %p2445_p11 = scmp.lt.s32.totalorder %s2439_s22, %s2991_s5 }
  0x72   : > { %1036 = vmatpush.bf16.msrb.mxu1 %v2035_v21  ;;  %p2446_p9 = scmp.lt.s32.totalorder %s2444_s11, %s2440_s7 }
  0x73   : > { %1085 = vmatpush.bf16.msrb.mxu2 %v1911_v11  ;;  %p2442_p4 = pnand %p2441_p1, %p2622_p3 }
  0x74   : > { %1134 = vmatpush.bf16.msrb.mxu3 %v2039_v17  ;;  %p2447_p2 = por %p2446_p9, %p2445_p11 }
  0x75   : > { %988 = vmatpush.bf16.msrb.mxu0 %v1891_v38  ;;  %p2443_p8 = pneg %p2442_p4 }
  0x76   : > { %1037 = vmatpush.bf16.msrb.mxu1 %v2019_v41 }
  0x77   : > { %1086 = vmatpush.bf16.msrb.mxu2 %v1895_v31  ;;  %p2448_p10 = pnand %p2447_p2, %p2443_p8 }
  0x78   : > { %803 = vmatmul.bf16.gmra.mxu0 %v2698_v32  ;;  %1135 = vmatpush.bf16.msrb.mxu3 %v2023_v37 }
  0x79   : > { %852 = vmatmul.bf16.gmra.mxu1 %v2700_v33 }
  0x7a   : > { %901 = vmatmul.bf16.gmra.mxu2 %v2698_v32 }
  0x7b   : > { %950 = vmatmul.bf16.gmra.mxu3 %v2700_v33 }
  0x88   : > { %808 = vmatmul.bf16.gmra.mxu0 %v2710_v52 }
  0x89   : > { %857 = vmatmul.bf16.gmra.mxu1 %v2712_v53 }
  0x8a   : > { %906 = vmatmul.bf16.gmra.mxu2 %v2710_v52 }
  0x8b   : > { %955 = vmatmul.bf16.gmra.mxu3 %v2712_v53 }
  0x98   : > { %813 = vmatmul.bf16.gmra.mxu0 %v2722_v6 }
  0x99   : > { %862 = vmatmul.bf16.gmra.mxu1 %v2724_v7 }
  0x9a   : > { %911 = vmatmul.bf16.gmra.mxu2 %v2722_v6 }
  0x9b   : > { %960 = vmatmul.bf16.gmra.mxu3 %v2724_v7 }
  0xa8   : > { %818 = vmatmul.bf16.gmra.mxu0 %v2734_v26 }
  0xa9   : > { %867 = vmatmul.bf16.gmra.mxu1 %v2736_v27 }
  0xaa   : > { %916 = vmatmul.bf16.gmra.mxu2 %v2734_v26 }
  0xab   : > { %965 = vmatmul.bf16.gmra.mxu3 %v2736_v27 }
  0xb8   : > { %823 = vmatmul.bf16.gmra.mxu0 %v2746_v47 }
  0xb9   : > { %872 = vmatmul.bf16.gmra.mxu1 %v2748_v48 }
  0xba   : > { %921 = vmatmul.bf16.gmra.mxu2 %v2746_v47 }
  0xbb   : > { %970 = vmatmul.bf16.gmra.mxu3 %v2748_v48 }
  0xc8   : > { %828 = vmatmul.bf16.gmra.mxu0 %v2758_v56 }
  0xc9   : > { %877 = vmatmul.bf16.gmra.mxu1 %v2760_v57 }
  0xca   : > { %926 = vmatmul.bf16.gmra.mxu2 %v2758_v56 }
  0xcb   : > { %975 = vmatmul.bf16.gmra.mxu3 %v2760_v57 }
  0xd5   : > { %v794_v60 = vpop.f32.mrf.mxu0 }
  0xd6   : > { %v795_v61 = vadd.f32 %v794_v60, %v2769_v59  ;;  %v843_v62 = vpop.f32.mrf.mxu1 }
  0xd8   : > { %v844_v63 = vadd.f32 %v843_v62, %v795_v61  ;;  %989 = vmatmul.bf16.vlgmr.msrb.gmra.mxu0 %v2674_v45 }
  0xd9   : > { %1038 = vmatmul.bf16.vlgmr.msrb.gmra.mxu1 %v2676_v49 }
  0xda   : > { %1087 = vmatmul.bf16.vlgmr.msrb.gmra.mxu2 %v2674_v45  ;;  %v1177_v11 = vmax.f32 %v844_v63, 0.0 }
  0xdb   : > { %1136 = vmatmul.bf16.vlgmr.msrb.gmra.mxu3 %v2676_v49 }
  0xdd   : > { %v892_v1 = vpop.f32.mrf.mxu2  ;;  %v796_v4 = vpop.f32.mrf.mxu0 }
  0xde   : > { %v893_v2 = vadd.f32 %v892_v1, %v2776_v0  ;;  %v941_v3 = vpop.f32.mrf.mxu3  ;;  %v797_v5 = vadd.f32 %v796_v4, %v2769_v59  ;;  %v845_v8 = vpop.f32.mrf.mxu1 }
  0xe0   : > { %v942_v9 = vadd.f32 %v941_v3, %v893_v2  ;;  %v846_v10 = vadd.f32 %v845_v8, %v797_v5 }
  0xe2   : > { %v1181_v12 = vmax.f32 %v846_v10, 0.0  ;;  %v1178_v22 = vmax.f32 %v942_v9, 0.0 }
  0xe4   : > { %v1241_v13 = vadd.f32 %v1181_v12, %v1177_v11 }
  0xe5   : > { %v894_v16 = vpop.f32.mrf.mxu2  ;;  %v799_v18 = vpop.f32.mrf.mxu0 }
  0xe6   : > { %v895_v45 = vadd.f32 %v894_v16, %v2776_v0  ;;  %v943_v17 = vpop.f32.mrf.mxu3  ;;  %v800_v49 = vadd.f32 %v799_v18, %v2769_v59  ;;  %v848_v19 = vpop.f32.mrf.mxu1  ;;  %v1242_v25 = vrot.slane %v1241_v13, 4 }
  0xe8   : > { %v944_v20 = vadd.f32 %v943_v17, %v895_v45  ;;  %v849_v21 = vadd.f32 %v848_v19, %v800_v49  ;;  %994 = vmatmul.bf16.gmra.mxu0 %v2686_v14  ;;  %v1243_v37 = vadd.f32 %v1242_v25, %v1241_v13 }
  0xe9   : > { %1043 = vmatmul.bf16.gmra.mxu1 %v2688_v15 }
  0xea   : > { %v1182_v23 = vmax.f32 %v944_v20, 0.0  ;;  %1092 = vmatmul.bf16.gmra.mxu2 %v2686_v14  ;;  %v1185_v39 = vmax.f32 %v849_v21, 0.0  ;;  %v1244_v42 = vrot.slane %v1243_v37, 2 }
  0xeb   : > { %1141 = vmatmul.bf16.gmra.mxu3 %v2688_v15 }
  0xec   : > { %v1248_v24 = vadd.f32 %v1182_v23, %v1178_v22  ;;  %v1245_v61 = vadd.f32 %v1244_v42, %v1243_v37 }
  0xed   : > { %v897_v28 = vpop.f32.mrf.mxu2  ;;  %v801_v31 = vpop.f32.mrf.mxu0 }
  0xee   : > { %v898_v29 = vadd.f32 %v897_v28, %v2776_v0  ;;  %v946_v30 = vpop.f32.mrf.mxu3  ;;  %v802_v34 = vadd.f32 %v801_v31, %v2769_v59  ;;  %v850_v35 = vpop.f32.mrf.mxu1  ;;  %v1249_v41 = vrot.slane %v1248_v24, 4  ;;  %v1246_v8 = vrot.slane %v1245_v61, 1 }
  0xf0   : > { %v947_v36 = vadd.f32 %v946_v30, %v898_v29  ;;  %v851_v38 = vadd.f32 %v850_v35, %v802_v34  ;;  %v1250_v55 = vadd.f32 %v1249_v41, %v1248_v24  ;;  %v1247_v20 = vadd.f32 %v1246_v8, %v1245_v61 }
  0xf2   : > { %v1189_v40 = vmax.f32 %v851_v38, 0.0  ;;  %v1186_v1 = vmax.f32 %v947_v36, 0.0  ;;  %v1251_v4 = vrot.slane %v1250_v55, 2 }
  0xf4   : > { %v1269_v14 = vadd.f32 %v1189_v40, %v1185_v39  ;;  %v1252_v49 = vadd.f32 %v1251_v4, %v1250_v55 }
  0xf5   : > { %v899_v43 = vpop.f32.mrf.mxu2  ;;  %v804_v46 = vpop.f32.mrf.mxu0 }
  0xf6   : > { %v900_v15 = vadd.f32 %v899_v43, %v2776_v0  ;;  %v948_v44 = vpop.f32.mrf.mxu3  ;;  %v1270_v50 = vrot.slane %v1269_v14, 4  ;;  %v805_v51 = vadd.f32 %v804_v46, %v2769_v59  ;;  %v853_v54 = vpop.f32.mrf.mxu1  ;;  %v1253_v28 = vrot.slane %v1252_v49, 1 }
  0xf8   : > { %v949_v60 = vadd.f32 %v948_v44, %v900_v15  ;;  %v1271_v62 = vadd.f32 %v1270_v50, %v1269_v14  ;;  %v854_v63 = vadd.f32 %v853_v54, %v805_v51  ;;  %999 = vmatmul.bf16.gmra.mxu0 %v2698_v32  ;;  %v1254_v41 = vadd.f32 %v1253_v28, %v1252_v49 }
  0xf9   : > { %1048 = vmatmul.bf16.gmra.mxu1 %v2700_v33 }
  0xfa   : > { %v1190_v2 = vmax.f32 %v949_v60, 0.0  ;;  %1097 = vmatmul.bf16.gmra.mxu2 %v2698_v32  ;;  %v1272_v3 = vrot.slane %v1271_v62, 2  ;;  %v1193_v24 = vmax.f32 %v854_v63, 0.0 }
  0xfb   : > { %1146 = vmatmul.bf16.gmra.mxu3 %v2700_v33 }
  0xfc   : > { %v1276_v5 = vadd.f32 %v1190_v2, %v1186_v1  ;;  %v1273_v9 = vadd.f32 %v1272_v3, %v1271_v62 }
  0xfd   : > { %v902_v10 = vpop.f32.mrf.mxu2  ;;  %v806_v16 = vpop.f32.mrf.mxu0 }
  0xfe   : > { %v1277_v11 = vrot.slane %v1276_v5, 4  ;;  %v903_v12 = vadd.f32 %v902_v10, %v2776_v0  ;;  %v951_v13 = vpop.f32.mrf.mxu3  ;;  %v1274_v45 = vrot.slane %v1273_v9, 1  ;;  %v807_v17 = vadd.f32 %v806_v16, %v2769_v59  ;;  %v855_v18 = vpop.f32.mrf.mxu1 }
 0x100   : > { %v1278_v32 = vadd.f32 %v1277_v11, %v1276_v5  ;;  %v952_v19 = vadd.f32 %v951_v13, %v903_v12  ;;  %v1275_v33 = vadd.f32 %v1274_v45, %v1273_v9  ;;  %v856_v21 = vadd.f32 %v855_v18, %v807_v17 }
 0x102   : > { %v1279_v22 = vrot.slane %v1278_v32, 2  ;;  %v1566_v23 = vsel %vm1565_vm0, %v1275_v33, %v1247_v20  ;;  %v1197_v25 = vmax.f32 %v856_v21, 0.0  ;;  %v1194_v46 = vmax.f32 %v952_v19, 0.0 }
 0x104   : > { %v1280_v29 = vadd.f32 %v1279_v22, %v1278_v32  ;;  %v1297_v30 = vadd.f32 %v1197_v25, %v1193_v24 }
 0x105   : > { %v904_v31 = vpop.f32.mrf.mxu2  ;;  %v809_v37 = vpop.f32.mrf.mxu0 }
 0x106   : > { %v1281_v34 = vrot.slane %v1280_v29, 1  ;;  %v905_v35 = vadd.f32 %v904_v31, %v2776_v0  ;;  %v953_v36 = vpop.f32.mrf.mxu3  ;;  %v1298_v38 = vrot.slane %v1297_v30, 4  ;;  %v810_v39 = vadd.f32 %v809_v37, %v2769_v59  ;;  %v858_v40 = vpop.f32.mrf.mxu1 }
 0x108   : > { %v1282_v42 = vadd.f32 %v1281_v34, %v1280_v29  ;;  %v954_v14 = vadd.f32 %v953_v36, %v905_v35  ;;  %v1299_v43 = vadd.f32 %v1298_v38, %v1297_v30  ;;  %v859_v15 = vadd.f32 %v858_v40, %v810_v39  ;;  %1004 = vmatmul.bf16.gmra.mxu0 %v2710_v52 }
 0x109   : > { %1053 = vmatmul.bf16.gmra.mxu1 %v2712_v53 }
 0x10a   : > { %v1579_v44 = vsel %vm1565_vm0, %v1282_v42, %v1254_v41  ;;  %v1198_v50 = vmax.f32 %v954_v14, 0.0  ;;  %1102 = vmatmul.bf16.gmra.mxu2 %v2710_v52  ;;  %v1300_v51 = vrot.slane %v1299_v43, 2  ;;  %v1201_v11 = vmax.f32 %v859_v15, 0.0 }
 0x10b   : > { %1151 = vmatmul.bf16.gmra.mxu3 %v2712_v53 }
 0x10c   : > { %v1304_v54 = vadd.f32 %v1198_v50, %v1194_v46  ;;  %v1301_v55 = vadd.f32 %v1300_v51, %v1299_v43  ;;  %v1479_v51 = vld [vmem:[#allocation8 + $0x70] sm:$0xff] }
 0x10d   : > { %v907_v60 = vpop.f32.mrf.mxu2  ;;  %v811_v1 = vpop.f32.mrf.mxu0 }
 0x10e   : > { %v1305_v61 = vrot.slane %v1304_v54, 4  ;;  %v908_v62 = vadd.f32 %v907_v60, %v2776_v0  ;;  %v956_v63 = vpop.f32.mrf.mxu3  ;;  %v1302_v2 = vrot.slane %v1301_v55, 1  ;;  %v812_v3 = vadd.f32 %v811_v1, %v2769_v59  ;;  %v860_v4 = vpop.f32.mrf.mxu1  ;;  %v1477_v60 = vld [vmem:[#allocation8 + $0x60] sm:$0xff] }
 0x110   : > { %v1306_v5 = vadd.f32 %v1305_v61, %v1304_v54  ;;  %v957_v8 = vadd.f32 %v956_v63, %v908_v62  ;;  %v1303_v9 = vadd.f32 %v1302_v2, %v1301_v55  ;;  %v861_v52 = vadd.f32 %v860_v4, %v812_v3  ;;  %v1478_v54 = vld [vmem:[#allocation8 + $0x68] sm:$0xff]  ;;  %v1496_v61 = vld [vmem:[#allocation8 + $0xf8] sm:$0xff]  ;;  %v1495_v3 = vld [vmem:[#allocation8 + $0xf0] sm:$0xff] }
 0x111   : > { %1624 = vmatpush.msra.mxu1 %v1496_v61  ;;  %v1476_v2 = vld [vmem:[#allocation8 + $0x58] sm:$0xff] }
 0x112   : > { %v1307_v10 = vrot.slane %v1306_v5, 2  ;;  %v1568_v53 = vsel %vm1567_vm1, %v1303_v9, %v1566_v23  ;;  %v1205_v12 = vmax.f32 %v861_v52, 0.0  ;;  %v1202_v24 = vmax.f32 %v957_v8, 0.0  ;;  %v1493_v8 = vld [vmem:[#allocation8 + $0xe0] sm:$0xff] }
 0x113   : > { %1625 = vmatpush.msra.mxu1 %v1495_v3  ;;  %v1473_v52 = vld [vmem:[#allocation8 + $0x40] sm:$0xff] }
 0x114   : > { %v1308_v13 = vadd.f32 %v1307_v10, %v1306_v5  ;;  %v1325_v16 = vadd.f32 %v1205_v12, %v1201_v11  ;;  %v1494_v5 = vld [vmem:[#allocation8 + $0xe8] sm:$0xff]  ;;  %v1492_v10 = vld [vmem:[#allocation8 + $0xd8] sm:$0xff] }
 0x115   : > { %v909_v45 = vpop.f32.mrf.mxu2  ;;  %v2809_v32 = vpop.f32.mrf.mxu0  ;;  %1626 = vmatpush.msra.mxu1 %v1494_v5 }
 0x116   : > { %v1309_v17 = vrot.slane %v1308_v13, 1  ;;  %v910_v18 = vadd.f32 %v909_v45, %v2776_v0  ;;  %v958_v49 = vpop.f32.mrf.mxu3  ;;  %v1326_v19 = vrot.slane %v1325_v16, 4  ;;  %v2811_v20 = vpop.f32.mrf.mxu1  ;;  %v815_v11 = vadd.f32 %v2809_v32, %v2769_v59  ;;  %v1471_v32 = vld [vmem:[#allocation8 + $0x30] sm:$0xff] }
 0x117   : > { %1627 = vmatpush.msra.mxu1 %v1493_v8 }
 0x118   : > { %v1310_v33 = vadd.f32 %v1309_v17, %v1308_v13  ;;  %v959_v21 = vadd.f32 %v958_v49, %v910_v18  ;;  %v1327_v22 = vadd.f32 %v1326_v19, %v1325_v16  ;;  %1009 = vmatmul.bf16.gmra.mxu0 %v2722_v6  ;;  %v1491_v16 = vld [vmem:[#allocation8 + $0xd0] sm:$0xff]  ;;  %v1472_v18 = vld [vmem:[#allocation8 + $0x38] sm:$0xff]  ;;  %v1490_v49 = vld [vmem:[#allocation8 + $0xc8] sm:$0xff] }
 0x119   : > { %1058 = vmatmul.bf16.gmra.mxu1 %v2724_v7 }
 0x11a   : > { %v1580_v23 = vsel %vm1567_vm1, %v1310_v33, %v1579_v44  ;;  %v1206_v25 = vmax.f32 %v959_v21, 0.0  ;;  %1107 = vmatmul.bf16.gmra.mxu2 %v2722_v6  ;;  %v1328_v28 = vrot.slane %v1327_v22, 2  ;;  %v1480_v44 = vld [vmem:[#allocation8 + $0x78] sm:$0xff]  ;;  %1628 = vmatpush.msra.mxu1 %v1492_v10  ;;  %v864_v33 = vadd.f32 %v2811_v20, %v815_v11  ;;  %v1489_v21 = vld [vmem:[#allocation8 + $0xc0] sm:$0xff] }
 0x11b   : > { %1156 = vmatmul.bf16.gmra.mxu3 %v2724_v7  ;;  %1604 = vmatpush.msra.mxu0 %v1480_v44  ;;  %v1486_v44 = vld [vmem:[#allocation8 + $0xa8] sm:$0xff] }
 0x11c   : > { %v1332_v29 = vadd.f32 %v1206_v25, %v1202_v24  ;;  %v1329_v30 = vadd.f32 %v1328_v28, %v1327_v22  ;;  %1629 = vmatpush.msra.mxu1 %v1491_v16  ;;  %v1470_v25 = vld [vmem:[#allocation8 + $0x28] sm:$0xff]  ;;  %v1488_v28 = vld [vmem:[#allocation8 + $0xb8] sm:$0xff]  ;;  %v1209_v20 = vmax.f32 %v864_v33, 0.0 }
 0x11d   : > { %v2818_v31 = vpop.f32.mrf.mxu2  ;;  %v816_v36 = vpop.f32.mrf.mxu0  ;;  %1605 = vmatpush.msra.mxu0 %v1479_v51 }
 0x11e   : > { %v1333_v34 = vrot.slane %v1332_v29, 4  ;;  %v2820_v35 = vpop.f32.mrf.mxu3  ;;  %v1330_v37 = vrot.slane %v1329_v30, 1  ;;  %v865_v38 = vpop.f32.mrf.mxu1  ;;  %v817_v9 = vadd.f32 %v816_v36, %v2769_v59  ;;  %1630 = vmatpush.msra.mxu1 %v1490_v49 }
 0x11f   : > { %1606 = vmatpush.msra.mxu0 %v1478_v54 }
 0x120   : > { %v1334_v39 = vadd.f32 %v1333_v34, %v1332_v29  ;;  %v1331_v40 = vadd.f32 %v1330_v37, %v1329_v30  ;;  %v866_v17 = vadd.f32 %v865_v38, %v817_v9  ;;  %1631 = vmatpush.msra.mxu1 %v1489_v21  ;;  %v1487_v37 = vld [vmem:[#allocation8 + $0xb0] sm:$0xff] }
 0x121   : > { %1607 = vmatpush.msra.mxu0 %v1477_v60  ;;  %v1485_v60 = vld [vmem:[#allocation8 + $0xa0] sm:$0xff] }
 0x122   : > { %v1335_v41 = vrot.slane %v1334_v39, 2  ;;  %v2823_v42 = vsel %vm1569_vm2, %v1331_v40, %v1568_v53  ;;  %1632 = vmatpush.msra.mxu1 %v1488_v28  ;;  %v1481_v28 = vld [vmem:[#allocation8 + $0x80] sm:$0xff] }
 0x123   : > { %1608 = vmatpush.msra.mxu0 %v1476_v2 }
 0x124   : > { %v1336_v6 = vadd.f32 %v1335_v41, %v1334_v39  ;;  %1633 = vmatpush.msra.mxu1 %v1487_v37 }
 0x125   : > { %v2825_v14 = vpop.f32.mrf.mxu2  ;;  %v819_v15 = vpop.f32.mrf.mxu0 }
 0x126   : > { %v1337_v7 = vrot.slane %v1336_v6, 1  ;;  %v2827_v43 = vpop.f32.mrf.mxu3  ;;  %v2829_v46 = vpop.f32.mrf.mxu1  ;;  %v820_v22 = vadd.f32 %v819_v15, %v2769_v59  ;;  %v915_v38 = vadd.f32 %v2825_v14, %v2776_v0  ;;  %v1468_v15 = vld [vmem:[#allocation8 + $0x18] sm:$0xff]  ;;  %1634 = vmatpush.msra.mxu1 %v1486_v44 }
 0x128   : > { %v1338_v50 = vadd.f32 %v1337_v7, %v1336_v6  ;;  %1014 = vmatmul.bf16.gmra.mxu0 %v2734_v26  ;;  %v964_v61 = vadd.f32 %v2827_v43, %v915_v38  ;;  %1635 = vmatpush.msra.mxu1 %v1485_v60 }
 0x129   : > { %1063 = vmatmul.bf16.gmra.mxu1 %v2736_v27 }
 0x12a   : > { %1112 = vmatmul.bf16.gmra.mxu2 %v2734_v26  ;;  %v2835_v55 = vsel %vm1569_vm2, %v1338_v50, %v1580_v23  ;;  %v1475_v26 = vld [vmem:[#allocation8 + $0x50] sm:$0xff]  ;;  %v1213_v23 = vmax.f32 %v866_v17, 0.0  ;;  %v913_v50 = vadd.f32 %v2818_v31, %v2776_v0  ;;  %v1466_v31 = vld [vmem:[#allocation8 + $0x8] sm:$0xff]  ;;  %v1214_v16 = vmax.f32 %v964_v61, 0.0 }
 0x12b   : > { %1161 = vmatmul.bf16.gmra.mxu3 %v2736_v27  ;;  %v1474_v27 = vld [vmem:[#allocation8 + $0x48] sm:$0xff]  ;;  %1609 = vmatpush.msra.mxu0 %v1475_v26 }
 0x12c   : > { %v1353_v41 = vadd.f32 %v1213_v23, %v1209_v20  ;;  %v962_v8 = vadd.f32 %v2820_v35, %v913_v50  ;;  %v1465_v35 = vld [vmem:[#allocation8] sm:$0xff] }
 0x12d   : > { %v2838_v62 = vpop.f32.mrf.mxu2  ;;  %v821_v1 = vpop.f32.mrf.mxu0  ;;  %1610 = vmatpush.msra.mxu0 %v1474_v27  ;;  %v1484_v27 = vld [vmem:[#allocation8 + $0x98] sm:$0xff] }
 0x12e   : > { %v2840_v63 = vpop.f32.mrf.mxu3  ;;  %v870_v4 = vpop.f32.mrf.mxu1  ;;  %v822_v19 = vadd.f32 %v821_v1, %v2769_v59  ;;  %v918_v14 = vadd.f32 %v2838_v62, %v2776_v0  ;;  %1636 = vmatpush.msra.mxu1 %v1484_v27 }
 0x12f   : > { %1611 = vmatpush.msra.mxu0 %v1473_v52 }
 0x130   : > { %v871_v29 = vadd.f32 %v870_v4, %v822_v19  ;;  %v1354_v4 = vrot.slane %v1353_v41, 4  ;;  %v967_v52 = vadd.f32 %v2840_v63, %v918_v14  ;;  %v1210_v19 = vmax.f32 %v962_v8, 0.0  ;;  %v1482_v63 = vld [vmem:[#allocation8 + $0x88] sm:$0xff] }
 0x131   : > { %1612 = vmatpush.msra.mxu0 %v1472_v18 }
 0x132   : > { %v1221_v51 = vmax.f32 %v871_v29, 0.0  ;;  %v1355_v17 = vadd.f32 %v1354_v4, %v1353_v41  ;;  %v1360_v23 = vadd.f32 %v1214_v16, %v1210_v19 }
 0x133   : > { %1613 = vmatpush.msra.mxu0 %v1471_v32  ;;  %v1218_v32 = vmax.f32 %v967_v52, 0.0 }
 0x134   : > { %v1356_v29 = vrot.slane %v1355_v17, 2 }
 0x135   : > { %v919_v53 = vpop.f32.mrf.mxu2  ;;  %v824_v13 = vpop.f32.mrf.mxu0  ;;  %1614 = vmatpush.msra.mxu0 %v1470_v25 }
 0x136   : > { %v968_v12 = vpop.f32.mrf.mxu3  ;;  %v873_v45 = vpop.f32.mrf.mxu1  ;;  %v825_v24 = vadd.f32 %v824_v13, %v2769_v59  ;;  %v920_v6 = vadd.f32 %v919_v53, %v2776_v0  ;;  %v1483_v13 = vld [vmem:[#allocation8 + $0x90] sm:$0xff]  ;;  %v1357_v41 = vadd.f32 %v1356_v29, %v1355_v17 }
 0x137   : > { %1637 = vmatpush.msra.mxu1 %v1483_v13  ;;  %v1528_v13 = vld [vmem:[#allocation8 + $0x1f8] sm:$0xff] }
 0x138   : > { %1019 = vmatmul.bf16.gmra.mxu0 %v2746_v47  ;;  %v874_v7 = vadd.f32 %v873_v45, %v825_v24  ;;  %v969_v26 = vadd.f32 %v968_v12, %v920_v6  ;;  %v1358_v60 = vrot.slane %v1357_v41, 1  ;;  %1664 = vmatpush.msra.mxu3 %v1528_v13  ;;  %v1510_v13 = vld [vmem:[#allocation8 + $0x168] sm:$0xff] }
 0x139   : > { %1068 = vmatmul.bf16.gmra.mxu1 %v2748_v48 }
 0x13a   : > { %1117 = vmatmul.bf16.gmra.mxu2 %v2746_v47  ;;  %v1469_v47 = vld [vmem:[#allocation8 + $0x20] sm:$0xff]  ;;  %v1225_v5 = vmax.f32 %v874_v7, 0.0  ;;  %v1222_v18 = vmax.f32 %v969_v26, 0.0  ;;  %1638 = vmatpush.msra.mxu1 %v1482_v63 }
 0x13b   : > { %1166 = vmatmul.bf16.gmra.mxu3 %v2748_v48  ;;  %v869_v48 = vadd.f32 %v2829_v46, %v820_v22  ;;  %1615 = vmatpush.msra.mxu0 %v1469_v47  ;;  %v1467_v46 = vld [vmem:[#allocation8 + $0x10] sm:$0xff] }
 0x13c   : > { %1639 = vmatpush.msra.mxu1 %v1481_v28 }
 0x13d   : > { %v922_v30 = vpop.f32.mrf.mxu2  ;;  %v826_v36 = vpop.f32.mrf.mxu0  ;;  %v1217_v1 = vmax.f32 %v869_v48, 0.0  ;;  %1616 = vmatpush.msra.mxu0 %v1468_v15  ;;  %v1361_v48 = vrot.slane %v1360_v23, 4 }
 0x13e   : > { %v971_v34 = vpop.f32.mrf.mxu3  ;;  %v827_v39 = vadd.f32 %v826_v36, %v2769_v59  ;;  %v875_v40 = vpop.f32.mrf.mxu1  ;;  %v923_v2 = vadd.f32 %v922_v30, %v2776_v0  ;;  %v1388_v30 = vadd.f32 %v1222_v18, %v1218_v32 }
 0x13f   : > { %v1381_v9 = vadd.f32 %v1221_v51, %v1217_v1  ;;  %1617 = vmatpush.msra.mxu0 %v1467_v46  ;;  %v1362_v51 = vadd.f32 %v1361_v48, %v1360_v23  ;;  %v2875_v46 = vperm.slane %v2766_v58, 2 }
 0x140   : > { %v876_v54 = vadd.f32 %v875_v40, %v827_v39  ;;  %v972_v12 = vadd.f32 %v971_v34, %v923_v2  ;;  %v1389_v6 = vrot.slane %v1388_v30, 4 }
 0x141   : > { %1618 = vmatpush.msra.mxu0 %v1466_v31  ;;  %v1382_v33 = vrot.slane %v1381_v9, 4  ;;  %v1363_v8 = vrot.slane %v1362_v51, 2 }
 0x142   : > { %v1229_v3 = vmax.f32 %v876_v54, 0.0  ;;  %v1226_v24 = vmax.f32 %v972_v12, 0.0  ;;  %v1390_v61 = vadd.f32 %v1389_v6, %v1388_v30 }
 0x143   : > { %1619 = vmatpush.msra.mxu0 %v1465_v35  ;;  %v1383_v20 = vadd.f32 %v1382_v33, %v1381_v9  ;;  %v2880_v35 = vperm.slane %v2766_v58, 3  ;;  %v1364_v19 = vadd.f32 %v1363_v8, %v1362_v51  ;;  %v1511_v51 = vld [vmem:[#allocation8 + $0x170] sm:$0xff] }
 0x144   : > { %v1409_v10 = vadd.f32 %v1229_v3, %v1225_v5 }
 0x145   : > { %v924_v62 = vpop.f32.mrf.mxu2  ;;  %v829_v11 = vpop.f32.mrf.mxu0 }
 0x146   : > { %v925_v43 = vadd.f32 %v924_v62, %v2776_v0  ;;  %v973_v53 = vpop.f32.mrf.mxu3  ;;  %v878_v45 = vpop.f32.mrf.mxu1  ;;  %v1410_v21 = vrot.slane %v1409_v10, 4  ;;  %v830_v25 = vadd.f32 %v829_v11, %v2769_v59  ;;  %v1512_v11 = vld [vmem:[#allocation8 + $0x178] sm:$0xff] }
 0x147   : > { %1644 = vmatpush.msra.mxu2 %v1512_v11 }
 0x148   : > { %v974_v49 = vadd.f32 %v973_v53, %v925_v43  ;;  %1024 = vmatmul.bf16.gmra.mxu0 %v2758_v56  ;;  %v1411_v47 = vadd.f32 %v1410_v21, %v1409_v10  ;;  %v1359_v10 = vadd.f32 %v1358_v60, %v1357_v41  ;;  %v1391_v43 = vrot.slane %v1390_v61, 2 }
 0x149   : > { %1073 = vmatmul.bf16.gmra.mxu1 %v2760_v57  ;;  %1645 = vmatpush.msra.mxu2 %v1511_v51 }
 0x14a   : > { %v1230_v22 = vmax.f32 %v974_v49, 0.0  ;;  %1122 = vmatmul.bf16.gmra.mxu2 %v2758_v56  ;;  %v879_v56 = vadd.f32 %v878_v45, %v830_v25  ;;  %v1412_v44 = vrot.slane %v1411_v47, 2  ;;  %v1392_v63 = vadd.f32 %v1391_v43, %v1390_v61 }
 0x14b   : > { %1171 = vmatmul.bf16.gmra.mxu3 %v2760_v57  ;;  %v1384_v57 = vrot.slane %v1383_v20, 2  ;;  %v1572_v58 = vsel %vm1571_vm3, %v1359_v10, %v2823_v42  ;;  %1646 = vmatpush.msra.mxu2 %v1510_v13 }
 0x14c   : > { %v1416_v34 = vadd.f32 %v1230_v22, %v1226_v24  ;;  %v1233_v54 = vmax.f32 %v879_v56, 0.0  ;;  %v1413_v4 = vadd.f32 %v1412_v44, %v1411_v47 }
 0x14d   : > { %v927_v36 = vpop.f32.mrf.mxu2  ;;  %v831_v38 = vpop.f32.mrf.mxu0  ;;  %v1385_v1 = vadd.f32 %v1384_v57, %v1383_v20 }
 0x14e   : > { %v976_v37 = vpop.f32.mrf.mxu3  ;;  %v832_v39 = vadd.f32 %v831_v38, %v2769_v59  ;;  %v880_v40 = vpop.f32.mrf.mxu1  ;;  %v1417_v7 = vrot.slane %v1416_v34, 4  ;;  %v928_v50 = vadd.f32 %v927_v36, %v2776_v0  ;;  %v1414_v18 = vrot.slane %v1413_v4, 1 }
 0x14f   : > { %v1386_v16 = vrot.slane %v1385_v1, 1  ;;  %v1393_v38 = vrot.slane %v1392_v63, 1 }
 0x150   : > { %v881_v15 = vadd.f32 %v880_v40, %v832_v39  ;;  %v1418_v2 = vadd.f32 %v1417_v7, %v1416_v34  ;;  %v977_v26 = vadd.f32 %v976_v37, %v928_v50  ;;  %v1415_v25 = vadd.f32 %v1414_v18, %v1413_v4 }
 0x151   : > { %v1387_v21 = vadd.f32 %v1386_v16, %v1385_v1  ;;  %v1365_v34 = vrot.slane %v1364_v19, 1  ;;  %v1526_v16 = vld [vmem:[#allocation8 + $0x1e8] sm:$0xff] }
 0x152   : > { %v1237_v14 = vmax.f32 %v881_v15, 0.0  ;;  %v1419_v12 = vrot.slane %v1418_v2, 2 }
 0x153   : > { %v1574_v6 = vsel %vm1573_vm4, %v1387_v21, %v1572_v58  ;;  %v1366_v15 = vadd.f32 %v1365_v34, %v1364_v19 }
 0x154   : > { %v1437_v59 = vadd.f32 %v1237_v14, %v1233_v54  ;;  %v1420_v22 = vadd.f32 %v1419_v12, %v1418_v2  ;;  %v1576_v7 = vsel %vm1575_vm5, %v1415_v25, %v1574_v6  ;;  %v1527_v54 = vld [vmem:[#allocation8 + $0x1f0] sm:$0xff]  ;;  %v1394_v14 = vadd.f32 %v1393_v38, %v1392_v63 }
 0x155   : > { %v929_v3 = vpop.f32.mrf.mxu2  ;;  %v990_v27 = vpop.f32.mrf.mxu0  ;;  %1665 = vmatpush.msra.mxu3 %v1527_v54 }
 0x156   : > { %v930_v5 = vadd.f32 %v929_v3, %v2776_v0  ;;  %v978_v31 = vpop.f32.mrf.mxu3  ;;  %v1438_v9 = vrot.slane %v1437_v59, 4  ;;  %v991_v62 = vadd.f32 %v990_v27, %v2875_v46  ;;  %v1039_v52 = vpop.f32.mrf.mxu1  ;;  %v1234_v0 = vmax.f32 %v977_v26, 0.0 }
 0x157   : > { %v1421_v39 = vrot.slane %v1420_v22, 1  ;;  %v1582_v27 = vsel %vm1571_vm3, %v1366_v15, %v2835_v55  ;;  %1666 = vmatpush.msra.mxu3 %v1526_v16 }
 0x158   : > { %v979_v53 = vadd.f32 %v978_v31, %v930_v5  ;;  %v1439_v45 = vadd.f32 %v1438_v9, %v1437_v59  ;;  %v1040_v17 = vadd.f32 %v1039_v52, %v991_v62  ;;  %v1583_v62 = vsel %vm1573_vm4, %v1394_v14, %v1582_v27 }
 0x159   : > { %v1422_v61 = vadd.f32 %v1421_v39, %v1420_v22 }
 0x15a   : > { %v1238_v49 = vmax.f32 %v979_v53, 0.0  ;;  %v1440_v33 = vrot.slane %v1439_v45, 2  ;;  %v1179_v42 = vmax.f32 %v1040_v17, 0.0 }
 0x15b   : > { %v1584_v10 = vsel %vm1575_vm5, %v1422_v61, %v1583_v62 }
 0x15c   : > { %v1444_v32 = vadd.f32 %v1238_v49, %v1234_v0  ;;  %v1441_v23 = vadd.f32 %v1440_v33, %v1439_v45 }
 0x15d   : > { %v1088_v24 = vpop.f32.mrf.mxu2  ;;  %v992_v20 = vpop.f32.mrf.mxu0 }
 0x15e   : > { %v1445_v28 = vrot.slane %v1444_v32, 4  ;;  %v1089_v29 = vadd.f32 %v1088_v24, %v2880_v35  ;;  %v1137_v30 = vpop.f32.mrf.mxu3  ;;  %v1442_v36 = vrot.slane %v1441_v23, 1  ;;  %v993_v47 = vadd.f32 %v992_v20, %v2875_v46  ;;  %v1041_v37 = vpop.f32.mrf.mxu1  ;;  %v1525_v24 = vld [vmem:[#allocation8 + $0x1e0] sm:$0xff] }
 0x15f   : > { %1667 = vmatpush.msra.mxu3 %v1525_v24 }
 0x160   : > { %v1446_v48 = vadd.f32 %v1445_v28, %v1444_v32  ;;  %v1138_v56 = vadd.f32 %v1137_v30, %v1089_v29  ;;  %v1443_v40 = vadd.f32 %v1442_v36, %v1441_v23  ;;  %v1042_v41 = vadd.f32 %v1041_v37, %v993_v47  ;;  %v1509_v23 = vld [vmem:[#allocation8 + $0x160] sm:$0xff] }
 0x161   : > { %1647 = vmatpush.msra.mxu2 %v1509_v23 }
 0x162   : > { %v1447_v57 = vrot.slane %v1446_v48, 2  ;;  %v1183_v44 = vmax.f32 %v1042_v41, 0.0  ;;  %v1578_v50 = vsel %vm1577_vm6, %v1443_v40, %v1576_v7  ;;  %v1180_v43 = vmax.f32 %v1138_v56, 0.0  ;;  %v1524_v7 = vld [vmem:[#allocation8 + $0x1d8] sm:$0xff] }
 0x163   : > { %1620 = vmatmul.f32.vlgmr.msra.gmra.mxu0 %v1578_v50  ;;  %1668 = vmatpush.msra.mxu3 %v1524_v7  ;;  %v1505_v7 = vld [vmem:[#allocation8 + $0x140] sm:$0xff] }
 0x164   : > { %v1448_v60 = vadd.f32 %v1447_v57, %v1446_v48  ;;  %v1255_v1 = vadd.f32 %v1183_v44, %v1179_v42  ;;  %v1508_v57 = vld [vmem:[#allocation8 + $0x158] sm:$0xff] }
 0x165   : > { %v1090_v2 = vpop.f32.mrf.mxu2  ;;  %v995_v26 = vpop.f32.mrf.mxu0  ;;  %1648 = vmatpush.msra.mxu2 %v1508_v57 }
 0x166   : > { %v1449_v59 = vrot.slane %v1448_v60, 1  ;;  %v1091_v3 = vadd.f32 %v1090_v2, %v2880_v35  ;;  %v1139_v4 = vpop.f32.mrf.mxu3  ;;  %v996_v5 = vadd.f32 %v995_v26, %v2875_v46  ;;  %v1044_v31 = vpop.f32.mrf.mxu1  ;;  %v1256_v45 = vrot.slane %v1255_v1, 4 }
 0x168   : > { %v1450_v8 = vadd.f32 %v1449_v59, %v1448_v60  ;;  %v1140_v9 = vadd.f32 %v1139_v4, %v1091_v3  ;;  %v1045_v52 = vadd.f32 %v1044_v31, %v996_v5  ;;  %v1257_v63 = vadd.f32 %v1256_v45, %v1255_v1 }
 0x16a   : > { %v1184_v53 = vmax.f32 %v1140_v9, 0.0  ;;  %v1585_v11 = vsel %vm1577_vm6, %v1450_v8, %v1584_v10  ;;  %v1187_v21 = vmax.f32 %v1045_v52, 0.0  ;;  %v1258_v28 = vrot.slane %v1257_v63, 2 }
 0x16b   : > { %1640 = vmatmul.f32.vlgmr.msra.gmra.mxu1 %v1585_v11 }
 0x16c   : > { %v1262_v12 = vadd.f32 %v1184_v53, %v1180_v43  ;;  %v1259_v56 = vadd.f32 %v1258_v28, %v1257_v63  ;;  %v1507_v43 = vld [vmem:[#allocation8 + $0x150] sm:$0xff]  ;;  %v1506_v28 = vld [vmem:[#allocation8 + $0x148] sm:$0xff] }
 0x16d   : > { %v1093_v17 = vpop.f32.mrf.mxu2  ;;  %v997_v0 = vpop.f32.mrf.mxu0  ;;  %v1523_v53 = vld [vmem:[#allocation8 + $0x1d0] sm:$0xff]  ;;  %1649 = vmatpush.msra.mxu2 %v1507_v43 }
 0x16e   : > { %v1094_v55 = vadd.f32 %v1093_v17, %v2880_v35  ;;  %v1142_v18 = vpop.f32.mrf.mxu3  ;;  %v998_v49 = vadd.f32 %v997_v0, %v2875_v46  ;;  %v1046_v19 = vpop.f32.mrf.mxu1  ;;  %v1263_v25 = vrot.slane %v1262_v12, 4  ;;  %v1260_v50 = vrot.slane %v1259_v56, 1  ;;  %1669 = vmatpush.msra.mxu3 %v1523_v53 }
 0x16f   : > { %1650 = vmatpush.msra.mxu2 %v1506_v28  ;;  %v1502_v28 = vld [vmem:[#allocation8 + $0x128] sm:$0xff] }
 0x170   : > { %v1143_v33 = vadd.f32 %v1142_v18, %v1094_v55  ;;  %v1047_v32 = vadd.f32 %v1046_v19, %v998_v49  ;;  %v1264_v38 = vadd.f32 %v1263_v25, %v1262_v12  ;;  %v1261_v31 = vadd.f32 %v1260_v50, %v1259_v56 }
 0x171   : > { %1651 = vmatpush.msra.mxu2 %v1505_v7 }
 0x172   : > { %v1191_v22 = vmax.f32 %v1047_v32, 0.0  ;;  %v1188_v41 = vmax.f32 %v1143_v33, 0.0  ;;  %v1265_v42 = vrot.slane %v1264_v38, 2 }
 0x174   : > { %v1283_v29 = vadd.f32 %v1191_v22, %v1187_v21  ;;  %v1266_v4 = vadd.f32 %v1265_v42, %v1264_v38 }
 0x175   : > { %v1095_v30 = vpop.f32.mrf.mxu2  ;;  %v1000_v34 = vpop.f32.mrf.mxu0 }
 0x176   : > { %v1096_v20 = vadd.f32 %v1095_v30, %v2880_v35  ;;  %v1144_v58 = vpop.f32.mrf.mxu3  ;;  %v1284_v36 = vrot.slane %v1283_v29, 4  ;;  %v1001_v47 = vadd.f32 %v1000_v34, %v2875_v46  ;;  %v1049_v37 = vpop.f32.mrf.mxu1  ;;  %v1267_v11 = vrot.slane %v1266_v4, 1 }
 0x178   : > { %v1145_v48 = vadd.f32 %v1144_v58, %v1096_v20  ;;  %v1285_v39 = vadd.f32 %v1284_v36, %v1283_v29  ;;  %v1050_v40 = vadd.f32 %v1049_v37, %v1001_v47  ;;  %v1268_v33 = vadd.f32 %v1267_v11, %v1266_v4  ;;  %v1522_v29 = vld [vmem:[#allocation8 + $0x1c8] sm:$0xff] }
 0x179   : > { %1670 = vmatpush.msra.mxu3 %v1522_v29  ;;  %v1518_v29 = vld [vmem:[#allocation8 + $0x1a8] sm:$0xff] }
 0x17a   : > { %v1192_v6 = vmax.f32 %v1145_v48, 0.0  ;;  %v1286_v15 = vrot.slane %v1285_v39, 2  ;;  %v1195_v52 = vmax.f32 %v1050_v40, 0.0 }
 0x17c   : > { %v1290_v44 = vadd.f32 %v1192_v6, %v1188_v41  ;;  %v1287_v51 = vadd.f32 %v1286_v15, %v1285_v39  ;;  %v1521_v15 = vld [vmem:[#allocation8 + $0x1c0] sm:$0xff] }
 0x17d   : > { %v1098_v54 = vpop.f32.mrf.mxu2  ;;  %v1002_v1 = vpop.f32.mrf.mxu0  ;;  %1671 = vmatpush.msra.mxu3 %v1521_v15 }
 0x17e   : > { %v1291_v14 = vrot.slane %v1290_v44, 4  ;;  %v1099_v60 = vadd.f32 %v1098_v54, %v2880_v35  ;;  %v1147_v61 = vpop.f32.mrf.mxu3  ;;  %v1288_v2 = vrot.slane %v1287_v51, 1  ;;  %v1003_v59 = vadd.f32 %v1002_v1, %v2875_v46  ;;  %v1051_v3 = vpop.f32.mrf.mxu1 }
 0x180   : > { %v1292_v26 = vadd.f32 %v1291_v14, %v1290_v44  ;;  %v1148_v5 = vadd.f32 %v1147_v61, %v1099_v60  ;;  %v1289_v27 = vadd.f32 %v1288_v2, %v1287_v51  ;;  %v1052_v8 = vadd.f32 %v1051_v3, %v1003_v59 }
 0x182   : > { %v1293_v9 = vrot.slane %v1292_v26, 2  ;;  %v1586_v62 = vsel %vm1565_vm0, %v1289_v27, %v1261_v31  ;;  %v1199_v10 = vmax.f32 %v1052_v8, 0.0  ;;  %v1196_v24 = vmax.f32 %v1148_v5, 0.0  ;;  %v1504_v31 = vld [vmem:[#allocation8 + $0x138] sm:$0xff] }
 0x183   : > { %v1520_v27 = vld [vmem:[#allocation8 + $0x1b8] sm:$0xff]  ;;  %1652 = vmatpush.msra.mxu2 %v1504_v31  ;;  %v1499_v31 = vld [vmem:[#allocation8 + $0x110] sm:$0xff] }
 0x184   : > { %v1294_v13 = vadd.f32 %v1293_v9, %v1292_v26  ;;  %v1311_v16 = vadd.f32 %v1199_v10, %v1195_v52  ;;  %1672 = vmatpush.msra.mxu3 %v1520_v27 }
 0x185   : > { %v1100_v12 = vpop.f32.mrf.mxu2  ;;  %v1005_v18 = vpop.f32.mrf.mxu0 }
 0x186   : > { %v1295_v45 = vrot.slane %v1294_v13, 1  ;;  %v1101_v17 = vadd.f32 %v1100_v12, %v2880_v35  ;;  %v1149_v55 = vpop.f32.mrf.mxu3  ;;  %v1312_v0 = vrot.slane %v1311_v16, 4  ;;  %v1006_v49 = vadd.f32 %v1005_v18, %v2875_v46  ;;  %v1054_v19 = vpop.f32.mrf.mxu1 }
 0x188   : > { %v1296_v63 = vadd.f32 %v1295_v45, %v1294_v13  ;;  %v1150_v32 = vadd.f32 %v1149_v55, %v1101_v17  ;;  %v1313_v21 = vadd.f32 %v1312_v0, %v1311_v16  ;;  %v1055_v22 = vadd.f32 %v1054_v19, %v1006_v49  ;;  %v1503_v0 = vld [vmem:[#allocation8 + $0x130] sm:$0xff] }
 0x189   : > { %v1519_v49 = vld [vmem:[#allocation8 + $0x1b0] sm:$0xff]  ;;  %1653 = vmatpush.msra.mxu2 %v1503_v0 }
 0x18a   : > { %v1593_v23 = vsel %vm1565_vm0, %v1296_v63, %v1268_v33  ;;  %v1200_v25 = vmax.f32 %v1150_v32, 0.0  ;;  %v1314_v30 = vrot.slane %v1313_v21, 2  ;;  %v1203_v50 = vmax.f32 %v1055_v22, 0.0  ;;  %1673 = vmatpush.msra.mxu3 %v1519_v49 }
 0x18b   : > { %1654 = vmatpush.msra.mxu2 %v1502_v28 }
 0x18c   : > { %v1318_v20 = vadd.f32 %v1200_v25, %v1196_v24  ;;  %v1315_v58 = vadd.f32 %v1314_v30, %v1313_v21  ;;  %1674 = vmatpush.msra.mxu3 %v1518_v29 }
 0x18d   : > { %v1103_v34 = vpop.f32.mrf.mxu2  ;;  %v1007_v38 = vpop.f32.mrf.mxu0 }
 0x18e   : > { %v1319_v36 = vrot.slane %v1318_v20, 4  ;;  %v1104_v47 = vadd.f32 %v1103_v34, %v2880_v35  ;;  %v1152_v37 = vpop.f32.mrf.mxu3  ;;  %v1316_v48 = vrot.slane %v1315_v58, 1  ;;  %v1008_v56 = vadd.f32 %v1007_v38, %v2875_v46  ;;  %v1056_v39 = vpop.f32.mrf.mxu1 }
 0x190   : > { %v1320_v40 = vadd.f32 %v1319_v36, %v1318_v20  ;;  %v1153_v41 = vadd.f32 %v1152_v37, %v1104_v47  ;;  %v1317_v6 = vadd.f32 %v1316_v48, %v1315_v58  ;;  %v1057_v57 = vadd.f32 %v1056_v39, %v1008_v56  ;;  %v1501_v47 = vld [vmem:[#allocation8 + $0x120] sm:$0xff] }
 0x191   : > { %v1517_v37 = vld [vmem:[#allocation8 + $0x1a0] sm:$0xff]  ;;  %1655 = vmatpush.msra.mxu2 %v1501_v47 }
 0x192   : > { %v1321_v42 = vrot.slane %v1320_v40, 2  ;;  %v1587_v44 = vsel %vm1567_vm1, %v1317_v6, %v1586_v62  ;;  %v1207_v51 = vmax.f32 %v1057_v57, 0.0  ;;  %v1204_v62 = vmax.f32 %v1153_v41, 0.0  ;;  %1675 = vmatpush.msra.mxu3 %v1517_v37  ;;  %v1500_v41 = vld [vmem:[#allocation8 + $0x118] sm:$0xff] }
 0x193   : > { %v1516_v6 = vld [vmem:[#allocation8 + $0x198] sm:$0xff]  ;;  %1656 = vmatpush.msra.mxu2 %v1500_v41 }
 0x194   : > { %v1322_v54 = vadd.f32 %v1321_v42, %v1320_v40  ;;  %v1339_v14 = vadd.f32 %v1207_v51, %v1203_v50  ;;  %1676 = vmatpush.msra.mxu3 %v1516_v6 }
 0x195   : > { %v1105_v60 = vpop.f32.mrf.mxu2  ;;  %v1010_v59 = vpop.f32.mrf.mxu0  ;;  %1657 = vmatpush.msra.mxu2 %v1499_v31 }
 0x196   : > { %v1323_v61 = vrot.slane %v1322_v54, 1  ;;  %v1106_v1 = vadd.f32 %v1105_v60, %v2880_v35  ;;  %v1154_v2 = vpop.f32.mrf.mxu3  ;;  %v1340_v3 = vrot.slane %v1339_v14, 4  ;;  %v2910_v4 = vpop.f32.mrf.mxu1  ;;  %v1011_v7 = vadd.f32 %v1010_v59, %v2875_v46 }
 0x198   : > { %v1324_v26 = vadd.f32 %v1323_v61, %v1322_v54  ;;  %v1155_v5 = vadd.f32 %v1154_v2, %v1106_v1  ;;  %v1341_v8 = vadd.f32 %v1340_v3, %v1339_v14  ;;  %v1060_v54 = vadd.f32 %v2910_v4, %v1011_v7 }
 0x19a   : > { %v1594_v9 = vsel %vm1567_vm1, %v1324_v26, %v1593_v23  ;;  %v1208_v52 = vmax.f32 %v1155_v5, 0.0  ;;  %v1342_v10 = vrot.slane %v1341_v8, 2  ;;  %v1211_v4 = vmax.f32 %v1060_v54, 0.0 }
 0x19c   : > { %v1346_v43 = vadd.f32 %v1208_v52, %v1204_v62  ;;  %v1343_v53 = vadd.f32 %v1342_v10, %v1341_v8  ;;  %v1515_v62 = vld [vmem:[#allocation8 + $0x190] sm:$0xff]  ;;  %v1498_v10 = vld [vmem:[#allocation8 + $0x108] sm:$0xff] }
 0x19d   : > { %v1108_v11 = vpop.f32.mrf.mxu2  ;;  %v1012_v12 = vpop.f32.mrf.mxu0  ;;  %1677 = vmatpush.msra.mxu3 %v1515_v62  ;;  %1658 = vmatpush.msra.mxu2 %v1498_v10 }
 0x19e   : > { %v1347_v13 = vrot.slane %v1346_v43, 4  ;;  %v2913_v16 = vpop.f32.mrf.mxu3  ;;  %v1344_v45 = vrot.slane %v1343_v53, 1  ;;  %v1061_v17 = vpop.f32.mrf.mxu1  ;;  %v1013_v40 = vadd.f32 %v1012_v12, %v2875_v46  ;;  %v1109_v27 = vadd.f32 %v1108_v11, %v2880_v35 }
 0x1a0   : > { %v1348_v55 = vadd.f32 %v1347_v13, %v1346_v43  ;;  %v1345_v18 = vadd.f32 %v1344_v45, %v1343_v53  ;;  %v1062_v42 = vadd.f32 %v1061_v17, %v1013_v40  ;;  %v1158_v11 = vadd.f32 %v2913_v16, %v1109_v27 }
 0x1a2   : > { %v1349_v19 = vrot.slane %v1348_v55, 2  ;;  %v2916_v33 = vsel %vm1569_vm2, %v1345_v18, %v1587_v44  ;;  %v1215_v26 = vmax.f32 %v1062_v42, 0.0  ;;  %v1497_v18 = vld [vmem:[#allocation8 + $0x100] sm:$0xff]  ;;  %v1212_v47 = vmax.f32 %v1158_v11, 0.0 }
 0x1a3   : > { %1659 = vmatpush.msra.mxu2 %v1497_v18 }
 0x1a4   : > { %v1350_v63 = vadd.f32 %v1349_v19, %v1348_v55  ;;  %v1367_v45 = vadd.f32 %v1215_v26, %v1211_v4 }
 0x1a5   : > { %v1110_v32 = vpop.f32.mrf.mxu2  ;;  %v1015_v23 = vpop.f32.mrf.mxu0 }
 0x1a6   : > { %v1351_v21 = vrot.slane %v1350_v63, 1  ;;  %v1159_v22 = vpop.f32.mrf.mxu3  ;;  %v1064_v24 = vpop.f32.mrf.mxu1  ;;  %v1016_v15 = vadd.f32 %v1015_v23, %v2875_v46  ;;  %v1111_v61 = vadd.f32 %v1110_v32, %v2880_v35  ;;  %v1368_v28 = vrot.slane %v1367_v45, 4 }
 0x1a8   : > { %v1352_v25 = vadd.f32 %v1351_v21, %v1350_v63  ;;  %v1065_v1 = vadd.f32 %v1064_v24, %v1016_v15  ;;  %v1160_v43 = vadd.f32 %v1159_v22, %v1111_v61  ;;  %v1369_v40 = vadd.f32 %v1368_v28, %v1367_v45 }
 0x1aa   : > { %v2919_v30 = vsel %vm1569_vm2, %v1352_v25, %v1594_v9  ;;  %v1219_v53 = vmax.f32 %v1065_v1, 0.0  ;;  %v1216_v23 = vmax.f32 %v1160_v43, 0.0 }
 0x1ad   : > { %v1113_v20 = vpop.f32.mrf.mxu2  ;;  %v1017_v34 = vpop.f32.mrf.mxu0 }
 0x1ae   : > { %v1162_v58 = vpop.f32.mrf.mxu3  ;;  %v1066_v36 = vpop.f32.mrf.mxu1  ;;  %v1018_v57 = vadd.f32 %v1017_v34, %v2875_v46  ;;  %v1114_v52 = vadd.f32 %v1113_v20, %v2880_v35  ;;  %v1514_v34 = vld [vmem:[#allocation8 + $0x188] sm:$0xff] }
 0x1af   : > { %1678 = vmatpush.msra.mxu3 %v1514_v34 }
 0x1b0   : > { %v1067_v50 = vadd.f32 %v1066_v36, %v1018_v57  ;;  %v1163_v19 = vadd.f32 %v1162_v58, %v1114_v52  ;;  %v1513_v36 = vld [vmem:[#allocation8 + $0x180] sm:$0xff]  ;;  %v1374_v58 = vadd.f32 %v1216_v23, %v1212_v47 }
 0x1b1   : > { %1679 = vmatpush.msra.mxu3 %v1513_v36 }
 0x1b2   : > { %v1223_v8 = vmax.f32 %v1067_v50, 0.0  ;;  %v1220_v16 = vmax.f32 %v1163_v19, 0.0  ;;  %v1375_v50 = vrot.slane %v1374_v58, 4 }
 0x1b4   : > { %v1395_v0 = vadd.f32 %v1223_v8, %v1219_v53 }
 0x1b5   : > { %v1115_v38 = vpop.f32.mrf.mxu2  ;;  %v1020_v56 = vpop.f32.mrf.mxu0 }
 0x1b6   : > { %v1164_v48 = vpop.f32.mrf.mxu3  ;;  %v1069_v39 = vpop.f32.mrf.mxu1  ;;  %v1021_v44 = vadd.f32 %v1020_v56, %v2875_v46  ;;  %v1116_v59 = vadd.f32 %v1115_v38, %v2880_v35  ;;  %v1396_v37 = vrot.slane %v1395_v0, 4 }
 0x1b8   : > { %v1070_v5 = vadd.f32 %v1069_v39, %v1021_v44  ;;  %v1165_v17 = vadd.f32 %v1164_v48, %v1116_v59  ;;  %v1397_v6 = vadd.f32 %v1396_v37, %v1395_v0 }
 0x1ba   : > { %v1227_v55 = vmax.f32 %v1070_v5, 0.0  ;;  %v1224_v29 = vmax.f32 %v1165_v17, 0.0  ;;  %v1398_v1 = vrot.slane %v1397_v6, 2  ;;  %v1376_v5 = vadd.f32 %v1375_v50, %v1374_v58 }
 0x1bc   : > { %v1402_v41 = vadd.f32 %v1224_v29, %v1220_v16  ;;  %v1399_v62 = vadd.f32 %v1398_v1, %v1397_v6 }
 0x1bd   : > { %v1118_v51 = vpop.f32.mrf.mxu2  ;;  %v1022_v60 = vpop.f32.mrf.mxu0 }
 0x1be   : > { %v1167_v14 = vpop.f32.mrf.mxu3  ;;  %v1023_v2 = vadd.f32 %v1022_v60, %v2875_v46  ;;  %v1071_v3 = vpop.f32.mrf.mxu1  ;;  %v1119_v13 = vadd.f32 %v1118_v51, %v2880_v35  ;;  %v1403_v60 = vrot.slane %v1402_v41, 4  ;;  %v1400_v11 = vrot.slane %v1399_v62, 1 }
 0x1c0   : > { %v1072_v9 = vadd.f32 %v1071_v3, %v1023_v2  ;;  %v1168_v24 = vadd.f32 %v1167_v14, %v1119_v13  ;;  %v1370_v14 = vrot.slane %v1369_v40, 2  ;;  %v1377_v13 = vrot.slane %v1376_v5, 2 }
 0x1c1   : > { %v1401_v28 = vadd.f32 %v1400_v11, %v1399_v62 }
 0x1c2   : > { %v1231_v12 = vmax.f32 %v1072_v9, 0.0  ;;  %v1228_v56 = vmax.f32 %v1168_v24, 0.0  ;;  %v1371_v8 = vadd.f32 %v1370_v14, %v1369_v40  ;;  %v1404_v9 = vadd.f32 %v1403_v60, %v1402_v41  ;;  %v2303_v14 = vld [vmem:[%s2990_s4] ss:$0 sm:$0xff] }
 0x1c4   : > { %v1423_v63 = vadd.f32 %v1231_v12, %v1227_v55  ;;  %v1372_v17 = vrot.slane %v1371_v8, 1  ;;  %v1405_v55 = vrot.slane %v1404_v9, 2 }
 0x1c5   : > { %v1120_v49 = vpop.f32.mrf.mxu2  ;;  %v1025_v22 = vpop.f32.mrf.mxu0 }
 0x1c6   : > { %v1121_v32 = vadd.f32 %v1120_v49, %v2880_v35  ;;  %v1169_v21 = vpop.f32.mrf.mxu3  ;;  %v1074_v25 = vpop.f32.mrf.mxu1  ;;  %v1424_v38 = vrot.slane %v1423_v63, 4  ;;  %v1026_v39 = vadd.f32 %v1025_v22, %v2875_v46  ;;  %v1373_v23 = vadd.f32 %v1372_v17, %v1371_v8 }
 0x1c7   : > { %v1406_v24 = vadd.f32 %v1405_v55, %v1404_v9 }
 0x1c8   : > { %v1170_v20 = vadd.f32 %v1169_v21, %v1121_v32  ;;  %v1425_v15 = vadd.f32 %v1424_v38, %v1423_v63  ;;  %v1075_v51 = vadd.f32 %v1074_v25, %v1026_v39  ;;  %v1378_v21 = vadd.f32 %v1377_v13, %v1376_v5 }
 0x1c9   : > { %v1407_v37 = vrot.slane %v1406_v24, 1  ;;  %v1589_v38 = vsel %vm1571_vm3, %v1373_v23, %v2916_v33 }
 0x1ca   : > { %v1232_v48 = vmax.f32 %v1170_v20, 0.0  ;;  %v1426_v26 = vrot.slane %v1425_v15, 2  ;;  %v1235_v31 = vmax.f32 %v1075_v51, 0.0  ;;  %v1379_v36 = vrot.slane %v1378_v21, 1 }
 0x1cc   : > { %v1430_v57 = vadd.f32 %v1232_v48, %v1228_v56  ;;  %v1427_v43 = vadd.f32 %v1426_v26, %v1425_v15  ;;  %v1590_v56 = vsel %vm1573_vm4, %v1401_v28, %v1589_v38  ;;  %v1380_v41 = vadd.f32 %v1379_v36, %v1378_v21 }
 0x1cd   : > { %v1123_v7 = vpop.f32.mrf.mxu2  ;;  %v1027_v44 = vpop.f32.mrf.mxu0 }
 0x1ce   : > { %v1172_v42 = vpop.f32.mrf.mxu3  ;;  %v1028_v54 = vadd.f32 %v1027_v44, %v2875_v46  ;;  %v1076_v61 = vpop.f32.mrf.mxu1  ;;  %v1431_v2 = vrot.slane %v1430_v57, 4  ;;  %v1124_v59 = vadd.f32 %v1123_v7, %v2880_v35  ;;  %v1428_v19 = vrot.slane %v1427_v43, 1 }
 0x1cf   : > { %v1596_v33 = vsel %vm1571_vm3, %v1380_v41, %v2919_v30 }
 0x1d0   : > { %v1077_v3 = vadd.f32 %v1076_v61, %v1028_v54  ;;  %v1432_v4 = vadd.f32 %v1431_v2, %v1430_v57  ;;  %v1173_v46 = vadd.f32 %v1172_v42, %v1124_v59  ;;  %v1429_v20 = vadd.f32 %v1428_v19, %v1427_v43 }
 0x1d1   : > { %v1408_v57 = vadd.f32 %v1407_v37, %v1406_v24 }
 0x1d2   : > { %v1239_v27 = vmax.f32 %v1077_v3, 0.0  ;;  %v1433_v0 = vrot.slane %v1432_v4, 2  ;;  %v1236_v63 = vmax.f32 %v1173_v46, 0.0  ;;  %v1591_v40 = vsel %vm1575_vm5, %v1429_v20, %v1590_v56 }
 0x1d3   : > { %v1597_v50 = vsel %vm1573_vm4, %v1408_v57, %v1596_v33 }
 0x1d4   : > { %v1451_v52 = vadd.f32 %v1239_v27, %v1235_v31  ;;  %v1434_v29 = vadd.f32 %v1433_v0, %v1432_v4 }
 0x1d5   : > { %v1125_v10 = vpop.f32.mrf.mxu2 }
 0x1d6   : > { %v1126_v53 = vadd.f32 %v1125_v10, %v2880_v35  ;;  %v1452_v12 = vrot.slane %v1451_v52, 4  ;;  %v1174_v45 = vpop.f32.mrf.mxu3  ;;  %v1435_v48 = vrot.slane %v1434_v29, 1 }
 0x1d8   : > { %v1175_v18 = vadd.f32 %v1174_v45, %v1126_v53  ;;  %v1453_v49 = vadd.f32 %v1452_v12, %v1451_v52  ;;  %v1436_v15 = vadd.f32 %v1435_v48, %v1434_v29 }
 0x1da   : > { %v1240_v32 = vmax.f32 %v1175_v18, 0.0  ;;  %v1454_v22 = vrot.slane %v1453_v49, 2  ;;  %v1598_v51 = vsel %vm1575_vm5, %v1436_v15, %v1597_v50 }
 0x1dc   : > { %v1458_v25 = vadd.f32 %v1240_v32, %v1236_v63  ;;  %v1455_v35 = vadd.f32 %v1454_v22, %v1453_v49 }
 0x1de   : > { %v1459_v34 = vrot.slane %v1458_v25, 4  ;;  %v1456_v47 = vrot.slane %v1455_v35, 1 }
 0x1e0   : > { %v1460_v16 = vadd.f32 %v1459_v34, %v1458_v25  ;;  %v1457_v58 = vadd.f32 %v1456_v47, %v1455_v35  ;;  %v1621_v60 = vpop.f32.mrf.mxu0 }
 0x1e1   : > { %v1622_v1 = vadd.f32 %v2303_v14, %v1621_v60 }
 0x1e2   : > { %v1461_v39 = vrot.slane %v1460_v16, 2  ;;  %v1592_v6 = vsel %vm1577_vm6, %v1457_v58, %v1591_v40 }
 0x1e3   : > { %1660 = vmatmul.f32.vlgmr.msra.gmra.mxu2 %v1592_v6 }
 0x1e4   : > { %v1462_v7 = vadd.f32 %v1461_v39, %v1460_v16 }
 0x1e6   : > { %v1463_v42 = vrot.slane %v1462_v7, 1 }
 0x1e8   : > { %v1464_v44 = vadd.f32 %v1463_v42, %v1462_v7  ;;  %v1641_v61 = vpop.f32.mrf.mxu1 }
 0x1e9   : > { %v1642_v2 = vadd.f32 %v1641_v61, %v1622_v1 }
 0x1ea   : > { %v1599_v54 = vsel %vm1577_vm6, %v1464_v44, %v1598_v51 }
 0x1eb   : > { %1680 = vmatmul.f32.vlgmr.msra.gmra.mxu3 %v1599_v54 }
 0x266   : > { %v1661_v30 = vpop.f32.mrf.mxu2 }
 0x267   : > { %v1662_v3 = vadd.f32 %v1661_v30, %v1642_v2 }
 0x26e   : > { %v1681_v26 = vpop.f32.mrf.mxu3 }
 0x26f   : > { %v1682_v59 = vadd.f32 %v1681_v26, %v1662_v3 }
 0x271   : > { %1684 = vst [vmem:[%s293_s13] sm:$0xff] %v1682_v59 }
 0x272   : > { %2451 = shalt.err (!%p2448_p10)
}
 0x273   : > { %2236 = dma.vmem_to_hbm [thread:$0]  (%p2622_p3), %s1699_s12, 128, %s1701_s14, %s1686_s15  }
 0x274 PF: > { %s1712_s17 = sand.u32 1, %s2486_s18   ;;  %p3000_p12 = scmp.ge.s32.totalorder %s2498_s21, 2 }
 0x275   : > { %s1713_s28 = scalar_lea.sflag [#allocation4], %s1712_s17 }
 0x276   : > { %p2253_p13 = pnand %p3000_p12, %p2572_p6 }
 0x278   : > { %p2254_p0 = pneg %p2253_p13 }
 0x27a   : > { %2481 = dma.done.wait (%p2254_p0), %s1713_s28, 128  }
 0x27b   : > { %2483 = vsyncadd (%p2254_p0), %s1713_s28, 4294967168  ;;  %p20_p5 = scmp.ge.s32.totalorder %s2609_s30, 4   ;;  %s3001_s18 = smov %s2490_s19 }
 0x27c   : > { %s3002_s19 = smov %s2494_s20  ;;  %s3003_s20 = smov %s2618_s9 }
 0x27d   : > { %s3004_s21 = smov %s2609_s30  ;;  %22 = sbr.rel (!%p20_p5) target bundleno = 7 (0x7), region = 97 }
 0x282   :  { %1719 = vsyncpa [#allocation3], 1 }
 0x283   :  { %1721 = vsyncpa [#allocation3 + $0x1], 1 }
 0x284   :  { %1722 = vsyncpa [#allocation6], 1 }
 0x285   :  { %1723 = vsyncpa [#allocation9], 1 }
 0x286   :  { %1724 = vsyncpa [#allocation4], 1 }
 0x287   :  { %1726 = vsyncpa [#allocation4 + $0x1], 1 }

</bundles_post_ra>
